<compile_context>
chip_gen: v7x
topology: tpu7x:2x2x1
jax: 0.10.0
libtpu: 0.0.40
codegen_flags: <defaults>
</compile_context>

<pallas_src>
import functools

import jax
import jax.numpy as jnp
from jax.experimental import pallas as pl
from jax.experimental.pallas import tpu as pltpu

EPS = 1e-5  # torch.nn.GroupNorm default eps


def _round_up(v, m):
    return (v + m - 1) // m * m


def _head_kernel(x_ref, valid_ref,
                 w1_ref, b1_ref, g1_ref, bt1_ref,
                 w2_ref, b2_ref, g2_ref, bt2_ref,
                 w3_ref, b3_ref,
                 out_ref, *, Wp, nb, cf, gn_count):
    """One grid step: `nb` images, each (C, Lp) lane-dense with an explicit zero
    border so every 3x3 tap is a static lane roll (no masks in the conv)."""
    Lp = x_ref.shape[-1]
    inv_n = 1.0 / gn_count
    validf = valid_ref[...]                                # (1, Lp) f32, host-built

    def conv3x3(x, w_ref, b_ref):
        # x: (Cl, Lp) f32, zero at border/pad lanes.  w_ref: (3, Cout_p, 3*Cl) bf16.
        cl = x.shape[0]
        y = None
        for t, dy in enumerate((-1, 0, 1)):
            wins = []
            for dx in (-1, 0, 1):
                off = dy * Wp + dx
                wins.append(x if off == 0 else pltpu.roll(x, (-off) % Lp, axis=1))
            # (3*cl, Lp): f32 concat is 8-sublane tile aligned; cast once for MXU.
            slab = jnp.concatenate(wins, axis=0)
            part = jnp.dot(w_ref[t], slab.astype(jnp.bfloat16),
                           preferred_element_type=jnp.float32)
            y = part if y is None else y + part            # f32 accumulate
        return y + b_ref[...]                              # (Cout_p, Lp) f32

    def gn1_relu(y, g_ref, bt_ref):
        # GroupNorm(num_groups=1) over the whole sample + affine + ReLU (f32).
        y = y * validf                                     # drop border/pad lanes
        mu = jnp.sum(y) * inv_n
        d = (y - mu) * validf                              # two-pass shifted variance
        dv = d if cf == d.shape[0] else d[:cf]             # ignore padded channels
        var = jnp.sum(dv * dv) * inv_n
        scale = jax.lax.rsqrt(var + EPS) * g_ref[...]      # (C,1); 0 on padded rows
        out = jnp.maximum(d * scale + bt_ref[...], 0.0)
        return out * validf                                # keep pad lanes exactly 0

    for i in range(nb):                                    # images per grid step
        x = x_ref[i]                                       # (Cin_p, Lp) f32
        a = gn1_relu(conv3x3(x, w1_ref, b1_ref), g1_ref, bt1_ref)
        a = gn1_relu(conv3x3(a, w2_ref, b2_ref), g2_ref, bt2_ref)
        out_ref[i] = conv3x3(a, w3_ref, b3_ref).astype(out_ref.dtype)


def base_head_forward(x, params, n_features, out_channels, images_per_step=None):
    """x: (N, H, W, Cin) f32 NHWC. Returns (N, H, W, out_channels) f32."""
    N, H, W, Cin = x.shape
    Hp, Wp = H + 2, W + 2                  # explicit zero border for the 3x3 halo
    L = Hp * Wp
    Lp = _round_up(L, 128)                 # lane-dense: unmasked vst, vreg-clean rolls
    Cin_p = _round_up(Cin, 8)
    Cf_p = _round_up(n_features, 8)
    Cout_p = _round_up(out_channels, 8)

    # Images per grid step: amortize per-step pipeline overhead, stay far under VMEM.
    nb = images_per_step
    if nb is None:
        per_img_bytes = 4 * Lp * (Cin_p + Cout_p + 8 * Cf_p)   # rough working set
        nb = N
        while nb > 1 and (N % nb or nb * per_img_bytes > (4 << 20)):
            nb -= 1
    assert N % nb == 0

    def flat_w(w, cin_p, cout_p):
        # (3,3,cin,cout) HWIO -> (ky, cout_p, kx*cin_p) bf16, zero-padded channels.
        kh, kw, cin, cout = w.shape
        w = jnp.pad(w, ((0, 0), (0, 0), (0, cin_p - cin), (0, cout_p - cout)))
        w = jnp.transpose(w, (0, 3, 1, 2)).reshape(kh, cout_p, kw * cin_p)
        return w.astype(jnp.bfloat16)

    def col(v, cp):
        return jnp.pad(v, (0, cp - v.shape[0])).reshape(cp, 1).astype(jnp.float32)

    kp = (
        flat_w(params['w1'], Cin_p, Cf_p), col(params['b1'], Cf_p),
        col(params['g1'], Cf_p), col(params['bt1'], Cf_p),
        flat_w(params['w2'], Cf_p, Cf_p), col(params['b2'], Cf_p),
        col(params['g2'], Cf_p), col(params['bt2'], Cf_p),
        flat_w(params['w3'], Cf_p, Cout_p), col(params['b3'], Cout_p),
    )

    # Valid-pixel mask over the padded lane layout (built once, host-side).
    lane = jnp.arange(Lp)
    row, colidx = lane // Wp, lane % Wp
    validf = (((row >= 1) & (row <= Hp - 2) & (colidx >= 1) & (colidx <= Wp - 2))
              .astype(jnp.float32).reshape(1, Lp))

    # NHWC -> channels-first, zero-bordered, lane-dense (N, Cin_p, Lp).
    # TODO(synk): accept channels-first features directly to drop this transpose.
    xc = jnp.transpose(x, (0, 3, 1, 2))
    xc = jnp.pad(xc, ((0, 0), (0, Cin_p - Cin), (1, 1), (1, 1)))
    xc = jnp.pad(xc.reshape(N, Cin_p, L), ((0, 0), (0, 0), (0, Lp - L)))

    kernel = functools.partial(_head_kernel, Wp=Wp, nb=nb, cf=n_features,
                               gn_count=float(n_features * H * W))

    def const_spec(p):
        return pl.BlockSpec(p.shape, lambda n, _nd=p.ndim: (0,) * _nd)

    in_specs = ([pl.BlockSpec((nb, Cin_p, Lp), lambda n: (n, 0, 0)),
                 const_spec(validf)] + [const_spec(p) for p in kp])
    out_spec = pl.BlockSpec((nb, Cout_p, Lp), lambda n: (n, 0, 0))

    flops = 2 * N * Lp * 9 * (Cin_p * Cf_p + Cf_p * Cf_p + Cf_p * Cout_p)
    bytes_accessed = int(4 * (xc.size + N * Cout_p * Lp)
                         + sum(p.size * p.dtype.itemsize for p in kp))

    out = pl.pallas_call(
        kernel,
        out_shape=jax.ShapeDtypeStruct((N, Cout_p, Lp), jnp.float32),
        grid=(N // nb,),
        in_specs=in_specs,
        out_specs=out_spec,
        compiler_params=pltpu.CompilerParams(dimension_semantics=("parallel",)),
        cost_estimate=pl.CostEstimate(flops=flops, transcendentals=4 * N,
                                      bytes_accessed=bytes_accessed),
    )(xc, validf, *kp)

    out = out[:, :out_channels, :L].reshape(N, out_channels, Hp, Wp)
    out = out[:, :, 1:H + 1, 1:W + 1]
    return jnp.transpose(out, (0, 2, 3, 1))


def init_params(key, in_channels, n_features, out_channels):
    """Deterministic synthetic parameters (HWIO conv weights)."""
    ks = jax.random.split(key, 10)

    def conv_w(k, cin, cout):
        scale = 1.0 / (3.0 * float(cin) ** 0.5)
        return jax.random.normal(k, (3, 3, cin, cout), jnp.float32) * scale

    return dict(
        w1=conv_w(ks[0], in_channels, n_features),
        b1=0.1 * jax.random.normal(ks[1], (n_features,), jnp.float32),
        g1=1.0 + 0.1 * jax.random.normal(ks[2], (n_features,), jnp.float32),
        bt1=0.1 * jax.random.normal(ks[3], (n_features,), jnp.float32),
        w2=conv_w(ks[4], n_features, n_features),
        b2=0.1 * jax.random.normal(ks[5], (n_features,), jnp.float32),
        g2=1.0 + 0.1 * jax.random.normal(ks[6], (n_features,), jnp.float32),
        bt2=0.1 * jax.random.normal(ks[7], (n_features,), jnp.float32),
        w3=conv_w(ks[8], n_features, out_channels),
        b3=0.1 * jax.random.normal(ks[9], (out_channels,), jnp.float32),
    )


def ref_forward(x, p):
    """Pure-JAX f32 reference (mirrors the PyTorch module math), NHWC."""
    def conv(x, w, b):
        y = jax.lax.conv_general_dilated(
            x, w, (1, 1), 'SAME',
            dimension_numbers=('NHWC', 'HWIO', 'NHWC'))
        return y + b

    def gn(x, g, bt):
        mu = jnp.mean(x, axis=(1, 2, 3), keepdims=True)
        var = jnp.mean(jnp.square(x - mu), axis=(1, 2, 3), keepdims=True)
        return (x - mu) * jax.lax.rsqrt(var + EPS) * g + bt

    y = jax.nn.relu(gn(conv(x, p['w1'], p['b1']), p['g1'], p['bt1']))
    y = jax.nn.relu(gn(conv(y, p['w2'], p['b2']), p['g2'], p['bt2']))
    y = conv(y, p['w3'], p['b3'])
    return y


if __name__ == "__main__":
    N, H, W = 2, 16, 16
    in_channels, n_features, out_channels = 4, 8, 2

    key = jax.random.PRNGKey(0)
    kx, kparam = jax.random.split(key)
    x = jax.random.normal(kx, (N, H, W, in_channels), jnp.float32)

    params = init_params(kparam, in_channels, n_features, out_channels)

    out = base_head_forward(x, params, n_features, out_channels)
    out = jax.block_until_ready(out)

    ref = jax.block_until_ready(ref_forward(x, params))
    assert out.shape == (N, H, W, out_channels)
    max_err = float(jnp.max(jnp.abs(out - ref)))
    # bf16 MXU operands vs f32 reference -> allow ~1e-2-scale deviation.
    assert jnp.allclose(out, ref, atol=2e-2, rtol=2e-2), f"max abs err {max_err}"

    print("KERNEL_OK")
</pallas_src>

<mosaic_0001>
module attributes {stable_mosaic.version = 11 : i64} {
  func.func @_head_kernel(%arg0: i32, %arg1: memref<2x8x384xf32, #tpu.memory_space<vmem>>, %arg2: memref<1x384xf32, #tpu.memory_space<vmem>>, %arg3: memref<3x8x24xbf16, #tpu.memory_space<vmem>>, %arg4: memref<8x1xf32, #tpu.memory_space<vmem>>, %arg5: memref<8x1xf32, #tpu.memory_space<vmem>>, %arg6: memref<8x1xf32, #tpu.memory_space<vmem>>, %arg7: memref<3x8x24xbf16, #tpu.memory_space<vmem>>, %arg8: memref<8x1xf32, #tpu.memory_space<vmem>>, %arg9: memref<8x1xf32, #tpu.memory_space<vmem>>, %arg10: memref<8x1xf32, #tpu.memory_space<vmem>>, %arg11: memref<3x8x24xbf16, #tpu.memory_space<vmem>>, %arg12: memref<8x1xf32, #tpu.memory_space<vmem>>, %arg13: memref<2x8x384xf32, #tpu.memory_space<vmem>>) attributes {dimension_semantics = [#tpu.dimension_semantics<parallel>], iteration_bounds = array<i64: 1>, scalar_prefetch = 0 : i64, scratch_operands = 0 : i64, tpu.core_type = #tpu.core_type<tc>, window_params = [{transform_indices = @transform_0, window_bounds = array<i64: 2, 8, 384>}, {pipeline_mode = #tpu.pipeline_mode<synchronous>, transform_indices = @transform_1, window_bounds = array<i64: 1, 384>}, {pipeline_mode = #tpu.pipeline_mode<synchronous>, transform_indices = @transform_2, window_bounds = array<i64: 3, 8, 24>}, {pipeline_mode = #tpu.pipeline_mode<synchronous>, transform_indices = @transform_3, window_bounds = array<i64: 8, 1>}, {pipeline_mode = #tpu.pipeline_mode<synchronous>, transform_indices = @transform_4, window_bounds = array<i64: 8, 1>}, {pipeline_mode = #tpu.pipeline_mode<synchronous>, transform_indices = @transform_5, window_bounds = array<i64: 8, 1>}, {pipeline_mode = #tpu.pipeline_mode<synchronous>, transform_indices = @transform_6, window_bounds = array<i64: 3, 8, 24>}, {pipeline_mode = #tpu.pipeline_mode<synchronous>, transform_indices = @transform_7, window_bounds = array<i64: 8, 1>}, {pipeline_mode = #tpu.pipeline_mode<synchronous>, transform_indices = @transform_8, window_bounds = array<i64: 8, 1>}, {pipeline_mode = #tpu.pipeline_mode<synchronous>, transform_indices = @transform_9, window_bounds = array<i64: 8, 1>}, {pipeline_mode = #tpu.pipeline_mode<synchronous>, transform_indices = @transform_10, window_bounds = array<i64: 3, 8, 24>}, {pipeline_mode = #tpu.pipeline_mode<synchronous>, transform_indices = @transform_11, window_bounds = array<i64: 8, 1>}, {transform_indices = @transform_12, window_bounds = array<i64: 2, 8, 384>}]} {
    %c0 = arith.constant 0 : index
    %c0_0 = arith.constant 0 : index
    %0 = vector.load %arg2[%c0, %c0_0] : memref<1x384xf32, #tpu.memory_space<vmem>>, vector<1x384xf32>
    %c0_1 = arith.constant 0 : index
    %c0_2 = arith.constant 0 : index
    %c0_3 = arith.constant 0 : index
    %1 = vector.load %arg1[%c0_1, %c0_2, %c0_3] : memref<2x8x384xf32, #tpu.memory_space<vmem>>, vector<1x8x384xf32>
    %2 = vector.shape_cast %1 : vector<1x8x384xf32> to vector<8x384xf32>
    %c19_i32 = arith.constant 19 : i32
    %3 = tpu.dynamic_rotate %2 by %c19_i32 dim 1 : vector<8x384xf32>, i32 -> vector<8x384xf32>
    %c18_i32 = arith.constant 18 : i32
    %4 = tpu.dynamic_rotate %2 by %c18_i32 dim 1 : vector<8x384xf32>, i32 -> vector<8x384xf32>
    %c17_i32 = arith.constant 17 : i32
    %5 = tpu.dynamic_rotate %2 by %c17_i32 dim 1 : vector<8x384xf32>, i32 -> vector<8x384xf32>
    %6 = tpu.concatenate %3, %4, %5 in 0 : vector<8x384xf32>, vector<8x384xf32>, vector<8x384xf32> -> vector<24x384xf32>
    %c0_4 = arith.constant 0 : index
    %c0_5 = arith.constant 0 : index
    %c0_6 = arith.constant 0 : index
    %7 = vector.load %arg3[%c0_4, %c0_5, %c0_6] : memref<3x8x24xbf16, #tpu.memory_space<vmem>>, vector<1x8x24xbf16>
    %8 = vector.shape_cast %7 : vector<1x8x24xbf16> to vector<8x24xbf16>
    %9 = arith.truncf %6 : vector<24x384xf32> to vector<24x384xbf16>
    %cst = arith.constant dense<0.000000e+00> : vector<8x384xf32>
    %10 = tpu.matmul %8, %9, %cst {dimension_numbers = #tpu.dot_dimension_numbers<[1], [0], [0], [1], [0, 0, 1, 1], [], []>} : vector<8x24xbf16>, vector<24x384xbf16>, vector<8x384xf32> -> vector<8x384xf32>
    %c1_i32 = arith.constant 1 : i32
    %11 = tpu.dynamic_rotate %2 by %c1_i32 dim 1 : vector<8x384xf32>, i32 -> vector<8x384xf32>
    %c383_i32 = arith.constant 383 : i32
    %12 = tpu.dynamic_rotate %2 by %c383_i32 dim 1 : vector<8x384xf32>, i32 -> vector<8x384xf32>
    %13 = tpu.concatenate %11, %2, %12 in 0 : vector<8x384xf32>, vector<8x384xf32>, vector<8x384xf32> -> vector<24x384xf32>
    %c1 = arith.constant 1 : index
    %c0_7 = arith.constant 0 : index
    %c0_8 = arith.constant 0 : index
    %14 = vector.load %arg3[%c1, %c0_7, %c0_8] : memref<3x8x24xbf16, #tpu.memory_space<vmem>>, vector<1x8x24xbf16>
    %15 = vector.shape_cast %14 : vector<1x8x24xbf16> to vector<8x24xbf16>
    %16 = arith.truncf %13 : vector<24x384xf32> to vector<24x384xbf16>
    %cst_9 = arith.constant dense<0.000000e+00> : vector<8x384xf32>
    %17 = tpu.matmul %15, %16, %cst_9 {dimension_numbers = #tpu.dot_dimension_numbers<[1], [0], [0], [1], [0, 0, 1, 1], [], []>} : vector<8x24xbf16>, vector<24x384xbf16>, vector<8x384xf32> -> vector<8x384xf32>
    %18 = arith.addf %10, %17 : vector<8x384xf32>
    %c367_i32 = arith.constant 367 : i32
    %19 = tpu.dynamic_rotate %2 by %c367_i32 dim 1 : vector<8x384xf32>, i32 -> vector<8x384xf32>
    %c366_i32 = arith.constant 366 : i32
    %20 = tpu.dynamic_rotate %2 by %c366_i32 dim 1 : vector<8x384xf32>, i32 -> vector<8x384xf32>
    %c365_i32 = arith.constant 365 : i32
    %21 = tpu.dynamic_rotate %2 by %c365_i32 dim 1 : vector<8x384xf32>, i32 -> vector<8x384xf32>
    %22 = tpu.concatenate %19, %20, %21 in 0 : vector<8x384xf32>, vector<8x384xf32>, vector<8x384xf32> -> vector<24x384xf32>
    %c2 = arith.constant 2 : index
    %c0_10 = arith.constant 0 : index
    %c0_11 = arith.constant 0 : index
    %23 = vector.load %arg3[%c2, %c0_10, %c0_11] : memref<3x8x24xbf16, #tpu.memory_space<vmem>>, vector<1x8x24xbf16>
    %24 = vector.shape_cast %23 : vector<1x8x24xbf16> to vector<8x24xbf16>
    %25 = arith.truncf %22 : vector<24x384xf32> to vector<24x384xbf16>
    %cst_12 = arith.constant dense<0.000000e+00> : vector<8x384xf32>
    %26 = tpu.matmul %24, %25, %cst_12 {dimension_numbers = #tpu.dot_dimension_numbers<[1], [0], [0], [1], [0, 0, 1, 1], [], []>} : vector<8x24xbf16>, vector<24x384xbf16>, vector<8x384xf32> -> vector<8x384xf32>
    %27 = arith.addf %18, %26 : vector<8x384xf32>
    %c0_13 = arith.constant 0 : index
    %c0_14 = arith.constant 0 : index
    %28 = vector.load %arg4[%c0_13, %c0_14] : memref<8x1xf32, #tpu.memory_space<vmem>>, vector<8x1xf32>
    %29 = vector.broadcast %28 : vector<8x1xf32> to vector<8x384xf32>
    %30 = arith.addf %27, %29 : vector<8x384xf32>
    %31 = vector.broadcast %0 : vector<1x384xf32> to vector<8x384xf32>
    %32 = arith.mulf %30, %31 : vector<8x384xf32>
    %33 = vector.shape_cast %32 : vector<8x384xf32> to vector<1x8x384xf32>
    %cst_15 = arith.constant dense<0.000000e+00> : vector<1xf32>
    %34 = vector.multi_reduction <add>, %33, %cst_15 [1, 2] : vector<1x8x384xf32> to vector<1xf32>
    %35 = vector.shape_cast %34 : vector<1xf32> to vector<1x1x1xf32>
    %36 = vector.extract %35[0, 0, 0] : f32 from vector<1x1x1xf32>
    %cst_16 = arith.constant 4.8828125E-4 : f32
    %37 = arith.mulf %36, %cst_16 : f32
    %38 = vector.broadcast %37 : f32 to vector<8x384xf32>
    %39 = arith.subf %32, %38 : vector<8x384xf32>
    %40 = vector.broadcast %0 : vector<1x384xf32> to vector<8x384xf32>
    %41 = arith.mulf %39, %40 : vector<8x384xf32>
    %42 = arith.mulf %41, %41 : vector<8x384xf32>
    %43 = vector.shape_cast %42 : vector<8x384xf32> to vector<1x8x384xf32>
    %cst_17 = arith.constant dense<0.000000e+00> : vector<1xf32>
    %44 = vector.multi_reduction <add>, %43, %cst_17 [1, 2] : vector<1x8x384xf32> to vector<1xf32>
    %45 = vector.shape_cast %44 : vector<1xf32> to vector<1x1x1xf32>
    %46 = vector.extract %45[0, 0, 0] : f32 from vector<1x1x1xf32>
    %cst_18 = arith.constant 4.8828125E-4 : f32
    %47 = arith.mulf %46, %cst_18 : f32
    %cst_19 = arith.constant 9.99999974E-6 : f32
    %48 = arith.addf %47, %cst_19 : f32
    %49 = math.rsqrt %48 : f32
    %c0_20 = arith.constant 0 : index
    %c0_21 = arith.constant 0 : index
    %50 = vector.load %arg5[%c0_20, %c0_21] : memref<8x1xf32, #tpu.memory_space<vmem>>, vector<8x1xf32>
    %51 = vector.broadcast %49 : f32 to vector<8x1xf32>
    %52 = arith.mulf %51, %50 : vector<8x1xf32>
    %53 = vector.broadcast %52 : vector<8x1xf32> to vector<8x384xf32>
    %54 = arith.mulf %41, %53 : vector<8x384xf32>
    %c0_22 = arith.constant 0 : index
    %c0_23 = arith.constant 0 : index
    %55 = vector.load %arg6[%c0_22, %c0_23] : memref<8x1xf32, #tpu.memory_space<vmem>>, vector<8x1xf32>
    %56 = vector.broadcast %55 : vector<8x1xf32> to vector<8x384xf32>
    %57 = arith.addf %54, %56 : vector<8x384xf32>
    %cst_24 = arith.constant 0.000000e+00 : f32
    %58 = vector.broadcast %cst_24 : f32 to vector<8x384xf32>
    %59 = arith.maximumf %57, %58 : vector<8x384xf32>
    %60 = vector.broadcast %0 : vector<1x384xf32> to vector<8x384xf32>
    %61 = arith.mulf %59, %60 : vector<8x384xf32>
    %c19_i32_25 = arith.constant 19 : i32
    %62 = tpu.dynamic_rotate %61 by %c19_i32_25 dim 1 : vector<8x384xf32>, i32 -> vector<8x384xf32>
    %c18_i32_26 = arith.constant 18 : i32
    %63 = tpu.dynamic_rotate %61 by %c18_i32_26 dim 1 : vector<8x384xf32>, i32 -> vector<8x384xf32>
    %c17_i32_27 = arith.constant 17 : i32
    %64 = tpu.dynamic_rotate %61 by %c17_i32_27 dim 1 : vector<8x384xf32>, i32 -> vector<8x384xf32>
    %65 = tpu.concatenate %62, %63, %64 in 0 : vector<8x384xf32>, vector<8x384xf32>, vector<8x384xf32> -> vector<24x384xf32>
    %c0_28 = arith.constant 0 : index
    %c0_29 = arith.constant 0 : index
    %c0_30 = arith.constant 0 : index
    %66 = vector.load %arg7[%c0_28, %c0_29, %c0_30] : memref<3x8x24xbf16, #tpu.memory_space<vmem>>, vector<1x8x24xbf16>
    %67 = vector.shape_cast %66 : vector<1x8x24xbf16> to vector<8x24xbf16>
    %68 = arith.truncf %65 : vector<24x384xf32> to vector<24x384xbf16>
    %cst_31 = arith.constant dense<0.000000e+00> : vector<8x384xf32>
    %69 = tpu.matmul %67, %68, %cst_31 {dimension_numbers = #tpu.dot_dimension_numbers<[1], [0], [0], [1], [0, 0, 1, 1], [], []>} : vector<8x24xbf16>, vector<24x384xbf16>, vector<8x384xf32> -> vector<8x384xf32>
    %c1_i32_32 = arith.constant 1 : i32
    %70 = tpu.dynamic_rotate %61 by %c1_i32_32 dim 1 : vector<8x384xf32>, i32 -> vector<8x384xf32>
    %c383_i32_33 = arith.constant 383 : i32
    %71 = tpu.dynamic_rotate %61 by %c383_i32_33 dim 1 : vector<8x384xf32>, i32 -> vector<8x384xf32>
    %72 = tpu.concatenate %70, %61, %71 in 0 : vector<8x384xf32>, vector<8x384xf32>, vector<8x384xf32> -> vector<24x384xf32>
    %c1_34 = arith.constant 1 : index
    %c0_35 = arith.constant 0 : index
    %c0_36 = arith.constant 0 : index
    %73 = vector.load %arg7[%c1_34, %c0_35, %c0_36] : memref<3x8x24xbf16, #tpu.memory_space<vmem>>, vector<1x8x24xbf16>
    %74 = vector.shape_cast %73 : vector<1x8x24xbf16> to vector<8x24xbf16>
    %75 = arith.truncf %72 : vector<24x384xf32> to vector<24x384xbf16>
    %cst_37 = arith.constant dense<0.000000e+00> : vector<8x384xf32>
    %76 = tpu.matmul %74, %75, %cst_37 {dimension_numbers = #tpu.dot_dimension_numbers<[1], [0], [0], [1], [0, 0, 1, 1], [], []>} : vector<8x24xbf16>, vector<24x384xbf16>, vector<8x384xf32> -> vector<8x384xf32>
    %77 = arith.addf %69, %76 : vector<8x384xf32>
    %c367_i32_38 = arith.constant 367 : i32
    %78 = tpu.dynamic_rotate %61 by %c367_i32_38 dim 1 : vector<8x384xf32>, i32 -> vector<8x384xf32>
    %c366_i32_39 = arith.constant 366 : i32
    %79 = tpu.dynamic_rotate %61 by %c366_i32_39 dim 1 : vector<8x384xf32>, i32 -> vector<8x384xf32>
    %c365_i32_40 = arith.constant 365 : i32
    %80 = tpu.dynamic_rotate %61 by %c365_i32_40 dim 1 : vector<8x384xf32>, i32 -> vector<8x384xf32>
    %81 = tpu.concatenate %78, %79, %80 in 0 : vector<8x384xf32>, vector<8x384xf32>, vector<8x384xf32> -> vector<24x384xf32>
    %c2_41 = arith.constant 2 : index
    %c0_42 = arith.constant 0 : index
    %c0_43 = arith.constant 0 : index
    %82 = vector.load %arg7[%c2_41, %c0_42, %c0_43] : memref<3x8x24xbf16, #tpu.memory_space<vmem>>, vector<1x8x24xbf16>
    %83 = vector.shape_cast %82 : vector<1x8x24xbf16> to vector<8x24xbf16>
    %84 = arith.truncf %81 : vector<24x384xf32> to vector<24x384xbf16>
    %cst_44 = arith.constant dense<0.000000e+00> : vector<8x384xf32>
    %85 = tpu.matmul %83, %84, %cst_44 {dimension_numbers = #tpu.dot_dimension_numbers<[1], [0], [0], [1], [0, 0, 1, 1], [], []>} : vector<8x24xbf16>, vector<24x384xbf16>, vector<8x384xf32> -> vector<8x384xf32>
    %86 = arith.addf %77, %85 : vector<8x384xf32>
    %c0_45 = arith.constant 0 : index
    %c0_46 = arith.constant 0 : index
    %87 = vector.load %arg8[%c0_45, %c0_46] : memref<8x1xf32, #tpu.memory_space<vmem>>, vector<8x1xf32>
    %88 = vector.broadcast %87 : vector<8x1xf32> to vector<8x384xf32>
    %89 = arith.addf %86, %88 : vector<8x384xf32>
    %90 = vector.broadcast %0 : vector<1x384xf32> to vector<8x384xf32>
    %91 = arith.mulf %89, %90 : vector<8x384xf32>
    %92 = vector.shape_cast %91 : vector<8x384xf32> to vector<1x8x384xf32>
    %cst_47 = arith.constant dense<0.000000e+00> : vector<1xf32>
    %93 = vector.multi_reduction <add>, %92, %cst_47 [1, 2] : vector<1x8x384xf32> to vector<1xf32>
    %94 = vector.shape_cast %93 : vector<1xf32> to vector<1x1x1xf32>
    %95 = vector.extract %94[0, 0, 0] : f32 from vector<1x1x1xf32>
    %cst_48 = arith.constant 4.8828125E-4 : f32
    %96 = arith.mulf %95, %cst_48 : f32
    %97 = vector.broadcast %96 : f32 to vector<8x384xf32>
    %98 = arith.subf %91, %97 : vector<8x384xf32>
    %99 = vector.broadcast %0 : vector<1x384xf32> to vector<8x384xf32>
    %100 = arith.mulf %98, %99 : vector<8x384xf32>
    %101 = arith.mulf %100, %100 : vector<8x384xf32>
    %102 = vector.shape_cast %101 : vector<8x384xf32> to vector<1x8x384xf32>
    %cst_49 = arith.constant dense<0.000000e+00> : vector<1xf32>
    %103 = vector.multi_reduction <add>, %102, %cst_49 [1, 2] : vector<1x8x384xf32> to vector<1xf32>
    %104 = vector.shape_cast %103 : vector<1xf32> to vector<1x1x1xf32>
    %105 = vector.extract %104[0, 0, 0] : f32 from vector<1x1x1xf32>
    %cst_50 = arith.constant 4.8828125E-4 : f32
    %106 = arith.mulf %105, %cst_50 : f32
    %cst_51 = arith.constant 9.99999974E-6 : f32
    %107 = arith.addf %106, %cst_51 : f32
    %108 = math.rsqrt %107 : f32
    %c0_52 = arith.constant 0 : index
    %c0_53 = arith.constant 0 : index
    %109 = vector.load %arg9[%c0_52, %c0_53] : memref<8x1xf32, #tpu.memory_space<vmem>>, vector<8x1xf32>
    %110 = vector.broadcast %108 : f32 to vector<8x1xf32>
    %111 = arith.mulf %110, %109 : vector<8x1xf32>
    %112 = vector.broadcast %111 : vector<8x1xf32> to vector<8x384xf32>
    %113 = arith.mulf %100, %112 : vector<8x384xf32>
    %c0_54 = arith.constant 0 : index
    %c0_55 = arith.constant 0 : index
    %114 = vector.load %arg10[%c0_54, %c0_55] : memref<8x1xf32, #tpu.memory_space<vmem>>, vector<8x1xf32>
    %115 = vector.broadcast %114 : vector<8x1xf32> to vector<8x384xf32>
    %116 = arith.addf %113, %115 : vector<8x384xf32>
    %cst_56 = arith.constant 0.000000e+00 : f32
    %117 = vector.broadcast %cst_56 : f32 to vector<8x384xf32>
    %118 = arith.maximumf %116, %117 : vector<8x384xf32>
    %119 = vector.broadcast %0 : vector<1x384xf32> to vector<8x384xf32>
    %120 = arith.mulf %118, %119 : vector<8x384xf32>
    %c19_i32_57 = arith.constant 19 : i32
    %121 = tpu.dynamic_rotate %120 by %c19_i32_57 dim 1 : vector<8x384xf32>, i32 -> vector<8x384xf32>
    %c18_i32_58 = arith.constant 18 : i32
    %122 = tpu.dynamic_rotate %120 by %c18_i32_58 dim 1 : vector<8x384xf32>, i32 -> vector<8x384xf32>
    %c17_i32_59 = arith.constant 17 : i32
    %123 = tpu.dynamic_rotate %120 by %c17_i32_59 dim 1 : vector<8x384xf32>, i32 -> vector<8x384xf32>
    %124 = tpu.concatenate %121, %122, %123 in 0 : vector<8x384xf32>, vector<8x384xf32>, vector<8x384xf32> -> vector<24x384xf32>
    %c0_60 = arith.constant 0 : index
    %c0_61 = arith.constant 0 : index
    %c0_62 = arith.constant 0 : index
    %125 = vector.load %arg11[%c0_60, %c0_61, %c0_62] : memref<3x8x24xbf16, #tpu.memory_space<vmem>>, vector<1x8x24xbf16>
    %126 = vector.shape_cast %125 : vector<1x8x24xbf16> to vector<8x24xbf16>
    %127 = arith.truncf %124 : vector<24x384xf32> to vector<24x384xbf16>
    %cst_63 = arith.constant dense<0.000000e+00> : vector<8x384xf32>
    %128 = tpu.matmul %126, %127, %cst_63 {dimension_numbers = #tpu.dot_dimension_numbers<[1], [0], [0], [1], [0, 0, 1, 1], [], []>} : vector<8x24xbf16>, vector<24x384xbf16>, vector<8x384xf32> -> vector<8x384xf32>
    %c1_i32_64 = arith.constant 1 : i32
    %129 = tpu.dynamic_rotate %120 by %c1_i32_64 dim 1 : vector<8x384xf32>, i32 -> vector<8x384xf32>
    %c383_i32_65 = arith.constant 383 : i32
    %130 = tpu.dynamic_rotate %120 by %c383_i32_65 dim 1 : vector<8x384xf32>, i32 -> vector<8x384xf32>
    %131 = tpu.concatenate %129, %120, %130 in 0 : vector<8x384xf32>, vector<8x384xf32>, vector<8x384xf32> -> vector<24x384xf32>
    %c1_66 = arith.constant 1 : index
    %c0_67 = arith.constant 0 : index
    %c0_68 = arith.constant 0 : index
    %132 = vector.load %arg11[%c1_66, %c0_67, %c0_68] : memref<3x8x24xbf16, #tpu.memory_space<vmem>>, vector<1x8x24xbf16>
    %133 = vector.shape_cast %132 : vector<1x8x24xbf16> to vector<8x24xbf16>
    %134 = arith.truncf %131 : vector<24x384xf32> to vector<24x384xbf16>
    %cst_69 = arith.constant dense<0.000000e+00> : vector<8x384xf32>
    %135 = tpu.matmul %133, %134, %cst_69 {dimension_numbers = #tpu.dot_dimension_numbers<[1], [0], [0], [1], [0, 0, 1, 1], [], []>} : vector<8x24xbf16>, vector<24x384xbf16>, vector<8x384xf32> -> vector<8x384xf32>
    %136 = arith.addf %128, %135 : vector<8x384xf32>
    %c367_i32_70 = arith.constant 367 : i32
    %137 = tpu.dynamic_rotate %120 by %c367_i32_70 dim 1 : vector<8x384xf32>, i32 -> vector<8x384xf32>
    %c366_i32_71 = arith.constant 366 : i32
    %138 = tpu.dynamic_rotate %120 by %c366_i32_71 dim 1 : vector<8x384xf32>, i32 -> vector<8x384xf32>
    %c365_i32_72 = arith.constant 365 : i32
    %139 = tpu.dynamic_rotate %120 by %c365_i32_72 dim 1 : vector<8x384xf32>, i32 -> vector<8x384xf32>
    %140 = tpu.concatenate %137, %138, %139 in 0 : vector<8x384xf32>, vector<8x384xf32>, vector<8x384xf32> -> vector<24x384xf32>
    %c2_73 = arith.constant 2 : index
    %c0_74 = arith.constant 0 : index
    %c0_75 = arith.constant 0 : index
    %141 = vector.load %arg11[%c2_73, %c0_74, %c0_75] : memref<3x8x24xbf16, #tpu.memory_space<vmem>>, vector<1x8x24xbf16>
    %142 = vector.shape_cast %141 : vector<1x8x24xbf16> to vector<8x24xbf16>
    %143 = arith.truncf %140 : vector<24x384xf32> to vector<24x384xbf16>
    %cst_76 = arith.constant dense<0.000000e+00> : vector<8x384xf32>
    %144 = tpu.matmul %142, %143, %cst_76 {dimension_numbers = #tpu.dot_dimension_numbers<[1], [0], [0], [1], [0, 0, 1, 1], [], []>} : vector<8x24xbf16>, vector<24x384xbf16>, vector<8x384xf32> -> vector<8x384xf32>
    %145 = arith.addf %136, %144 : vector<8x384xf32>
    %c0_77 = arith.constant 0 : index
    %c0_78 = arith.constant 0 : index
    %146 = vector.load %arg12[%c0_77, %c0_78] : memref<8x1xf32, #tpu.memory_space<vmem>>, vector<8x1xf32>
    %147 = vector.broadcast %146 : vector<8x1xf32> to vector<8x384xf32>
    %148 = arith.addf %145, %147 : vector<8x384xf32>
    %c0_79 = arith.constant 0 : index
    %c0_80 = arith.constant 0 : index
    %c0_81 = arith.constant 0 : index
    %149 = vector.load %arg13[%c0_79, %c0_80, %c0_81] : memref<2x8x384xf32, #tpu.memory_space<vmem>>, vector<1x8x384xf32>
    %150 = vector.shape_cast %149 : vector<1x8x384xf32> to vector<8x384xf32>
    %151 = vector.shape_cast %148 : vector<8x384xf32> to vector<1x8x384xf32>
    tpu.vector_store %arg13[%c0_79, %c0_80, %c0_81], %151 {strides = array<i32>} : memref<2x8x384xf32, #tpu.memory_space<vmem>>, vector<1x8x384xf32>,
    %c1_82 = arith.constant 1 : index
    %c0_83 = arith.constant 0 : index
    %c0_84 = arith.constant 0 : index
    %152 = vector.load %arg1[%c1_82, %c0_83, %c0_84] : memref<2x8x384xf32, #tpu.memory_space<vmem>>, vector<1x8x384xf32>
    %153 = vector.shape_cast %152 : vector<1x8x384xf32> to vector<8x384xf32>
    %c19_i32_85 = arith.constant 19 : i32
    %154 = tpu.dynamic_rotate %153 by %c19_i32_85 dim 1 : vector<8x384xf32>, i32 -> vector<8x384xf32>
    %c18_i32_86 = arith.constant 18 : i32
    %155 = tpu.dynamic_rotate %153 by %c18_i32_86 dim 1 : vector<8x384xf32>, i32 -> vector<8x384xf32>
    %c17_i32_87 = arith.constant 17 : i32
    %156 = tpu.dynamic_rotate %153 by %c17_i32_87 dim 1 : vector<8x384xf32>, i32 -> vector<8x384xf32>
    %157 = tpu.concatenate %154, %155, %156 in 0 : vector<8x384xf32>, vector<8x384xf32>, vector<8x384xf32> -> vector<24x384xf32>
    %c0_88 = arith.constant 0 : index
    %c0_89 = arith.constant 0 : index
    %c0_90 = arith.constant 0 : index
    %158 = vector.load %arg3[%c0_88, %c0_89, %c0_90] : memref<3x8x24xbf16, #tpu.memory_space<vmem>>, vector<1x8x24xbf16>
    %159 = vector.shape_cast %158 : vector<1x8x24xbf16> to vector<8x24xbf16>
    %160 = arith.truncf %157 : vector<24x384xf32> to vector<24x384xbf16>
    %cst_91 = arith.constant dense<0.000000e+00> : vector<8x384xf32>
    %161 = tpu.matmul %159, %160, %cst_91 {dimension_numbers = #tpu.dot_dimension_numbers<[1], [0], [0], [1], [0, 0, 1, 1], [], []>} : vector<8x24xbf16>, vector<24x384xbf16>, vector<8x384xf32> -> vector<8x384xf32>
    %c1_i32_92 = arith.constant 1 : i32
    %162 = tpu.dynamic_rotate %153 by %c1_i32_92 dim 1 : vector<8x384xf32>, i32 -> vector<8x384xf32>
    %c383_i32_93 = arith.constant 383 : i32
    %163 = tpu.dynamic_rotate %153 by %c383_i32_93 dim 1 : vector<8x384xf32>, i32 -> vector<8x384xf32>
    %164 = tpu.concatenate %162, %153, %163 in 0 : vector<8x384xf32>, vector<8x384xf32>, vector<8x384xf32> -> vector<24x384xf32>
    %c1_94 = arith.constant 1 : index
    %c0_95 = arith.constant 0 : index
    %c0_96 = arith.constant 0 : index
    %165 = vector.load %arg3[%c1_94, %c0_95, %c0_96] : memref<3x8x24xbf16, #tpu.memory_space<vmem>>, vector<1x8x24xbf16>
    %166 = vector.shape_cast %165 : vector<1x8x24xbf16> to vector<8x24xbf16>
    %167 = arith.truncf %164 : vector<24x384xf32> to vector<24x384xbf16>
    %cst_97 = arith.constant dense<0.000000e+00> : vector<8x384xf32>
    %168 = tpu.matmul %166, %167, %cst_97 {dimension_numbers = #tpu.dot_dimension_numbers<[1], [0], [0], [1], [0, 0, 1, 1], [], []>} : vector<8x24xbf16>, vector<24x384xbf16>, vector<8x384xf32> -> vector<8x384xf32>
    %169 = arith.addf %161, %168 : vector<8x384xf32>
    %c367_i32_98 = arith.constant 367 : i32
    %170 = tpu.dynamic_rotate %153 by %c367_i32_98 dim 1 : vector<8x384xf32>, i32 -> vector<8x384xf32>
    %c366_i32_99 = arith.constant 366 : i32
    %171 = tpu.dynamic_rotate %153 by %c366_i32_99 dim 1 : vector<8x384xf32>, i32 -> vector<8x384xf32>
    %c365_i32_100 = arith.constant 365 : i32
    %172 = tpu.dynamic_rotate %153 by %c365_i32_100 dim 1 : vector<8x384xf32>, i32 -> vector<8x384xf32>
    %173 = tpu.concatenate %170, %171, %172 in 0 : vector<8x384xf32>, vector<8x384xf32>, vector<8x384xf32> -> vector<24x384xf32>
    %c2_101 = arith.constant 2 : index
    %c0_102 = arith.constant 0 : index
    %c0_103 = arith.constant 0 : index
    %174 = vector.load %arg3[%c2_101, %c0_102, %c0_103] : memref<3x8x24xbf16, #tpu.memory_space<vmem>>, vector<1x8x24xbf16>
    %175 = vector.shape_cast %174 : vector<1x8x24xbf16> to vector<8x24xbf16>
    %176 = arith.truncf %173 : vector<24x384xf32> to vector<24x384xbf16>
    %cst_104 = arith.constant dense<0.000000e+00> : vector<8x384xf32>
    %177 = tpu.matmul %175, %176, %cst_104 {dimension_numbers = #tpu.dot_dimension_numbers<[1], [0], [0], [1], [0, 0, 1, 1], [], []>} : vector<8x24xbf16>, vector<24x384xbf16>, vector<8x384xf32> -> vector<8x384xf32>
    %178 = arith.addf %169, %177 : vector<8x384xf32>
    %c0_105 = arith.constant 0 : index
    %c0_106 = arith.constant 0 : index
    %179 = vector.load %arg4[%c0_105, %c0_106] : memref<8x1xf32, #tpu.memory_space<vmem>>, vector<8x1xf32>
    %180 = vector.broadcast %179 : vector<8x1xf32> to vector<8x384xf32>
    %181 = arith.addf %178, %180 : vector<8x384xf32>
    %182 = vector.broadcast %0 : vector<1x384xf32> to vector<8x384xf32>
    %183 = arith.mulf %181, %182 : vector<8x384xf32>
    %184 = vector.shape_cast %183 : vector<8x384xf32> to vector<1x8x384xf32>
    %cst_107 = arith.constant dense<0.000000e+00> : vector<1xf32>
    %185 = vector.multi_reduction <add>, %184, %cst_107 [1, 2] : vector<1x8x384xf32> to vector<1xf32>
    %186 = vector.shape_cast %185 : vector<1xf32> to vector<1x1x1xf32>
    %187 = vector.extract %186[0, 0, 0] : f32 from vector<1x1x1xf32>
    %cst_108 = arith.constant 4.8828125E-4 : f32
    %188 = arith.mulf %187, %cst_108 : f32
    %189 = vector.broadcast %188 : f32 to vector<8x384xf32>
    %190 = arith.subf %183, %189 : vector<8x384xf32>
    %191 = vector.broadcast %0 : vector<1x384xf32> to vector<8x384xf32>
    %192 = arith.mulf %190, %191 : vector<8x384xf32>
    %193 = arith.mulf %192, %192 : vector<8x384xf32>
    %194 = vector.shape_cast %193 : vector<8x384xf32> to vector<1x8x384xf32>
    %cst_109 = arith.constant dense<0.000000e+00> : vector<1xf32>
    %195 = vector.multi_reduction <add>, %194, %cst_109 [1, 2] : vector<1x8x384xf32> to vector<1xf32>
    %196 = vector.shape_cast %195 : vector<1xf32> to vector<1x1x1xf32>
    %197 = vector.extract %196[0, 0, 0] : f32 from vector<1x1x1xf32>
    %cst_110 = arith.constant 4.8828125E-4 : f32
    %198 = arith.mulf %197, %cst_110 : f32
    %cst_111 = arith.constant 9.99999974E-6 : f32
    %199 = arith.addf %198, %cst_111 : f32
    %200 = math.rsqrt %199 : f32
    %c0_112 = arith.constant 0 : index
    %c0_113 = arith.constant 0 : index
    %201 = vector.load %arg5[%c0_112, %c0_113] : memref<8x1xf32, #tpu.memory_space<vmem>>, vector<8x1xf32>
    %202 = vector.broadcast %200 : f32 to vector<8x1xf32>
    %203 = arith.mulf %202, %201 : vector<8x1xf32>
    %204 = vector.broadcast %203 : vector<8x1xf32> to vector<8x384xf32>
    %205 = arith.mulf %192, %204 : vector<8x384xf32>
    %c0_114 = arith.constant 0 : index
    %c0_115 = arith.constant 0 : index
    %206 = vector.load %arg6[%c0_114, %c0_115] : memref<8x1xf32, #tpu.memory_space<vmem>>, vector<8x1xf32>
    %207 = vector.broadcast %206 : vector<8x1xf32> to vector<8x384xf32>
    %208 = arith.addf %205, %207 : vector<8x384xf32>
    %cst_116 = arith.constant 0.000000e+00 : f32
    %209 = vector.broadcast %cst_116 : f32 to vector<8x384xf32>
    %210 = arith.maximumf %208, %209 : vector<8x384xf32>
    %211 = vector.broadcast %0 : vector<1x384xf32> to vector<8x384xf32>
    %212 = arith.mulf %210, %211 : vector<8x384xf32>
    %c19_i32_117 = arith.constant 19 : i32
    %213 = tpu.dynamic_rotate %212 by %c19_i32_117 dim 1 : vector<8x384xf32>, i32 -> vector<8x384xf32>
    %c18_i32_118 = arith.constant 18 : i32
    %214 = tpu.dynamic_rotate %212 by %c18_i32_118 dim 1 : vector<8x384xf32>, i32 -> vector<8x384xf32>
    %c17_i32_119 = arith.constant 17 : i32
    %215 = tpu.dynamic_rotate %212 by %c17_i32_119 dim 1 : vector<8x384xf32>, i32 -> vector<8x384xf32>
    %216 = tpu.concatenate %213, %214, %215 in 0 : vector<8x384xf32>, vector<8x384xf32>, vector<8x384xf32> -> vector<24x384xf32>
    %c0_120 = arith.constant 0 : index
    %c0_121 = arith.constant 0 : index
    %c0_122 = arith.constant 0 : index
    %217 = vector.load %arg7[%c0_120, %c0_121, %c0_122] : memref<3x8x24xbf16, #tpu.memory_space<vmem>>, vector<1x8x24xbf16>
    %218 = vector.shape_cast %217 : vector<1x8x24xbf16> to vector<8x24xbf16>
    %219 = arith.truncf %216 : vector<24x384xf32> to vector<24x384xbf16>
    %cst_123 = arith.constant dense<0.000000e+00> : vector<8x384xf32>
    %220 = tpu.matmul %218, %219, %cst_123 {dimension_numbers = #tpu.dot_dimension_numbers<[1], [0], [0], [1], [0, 0, 1, 1], [], []>} : vector<8x24xbf16>, vector<24x384xbf16>, vector<8x384xf32> -> vector<8x384xf32>
    %c1_i32_124 = arith.constant 1 : i32
    %221 = tpu.dynamic_rotate %212 by %c1_i32_124 dim 1 : vector<8x384xf32>, i32 -> vector<8x384xf32>
    %c383_i32_125 = arith.constant 383 : i32
    %222 = tpu.dynamic_rotate %212 by %c383_i32_125 dim 1 : vector<8x384xf32>, i32 -> vector<8x384xf32>
    %223 = tpu.concatenate %221, %212, %222 in 0 : vector<8x384xf32>, vector<8x384xf32>, vector<8x384xf32> -> vector<24x384xf32>
    %c1_126 = arith.constant 1 : index
    %c0_127 = arith.constant 0 : index
    %c0_128 = arith.constant 0 : index
    %224 = vector.load %arg7[%c1_126, %c0_127, %c0_128] : memref<3x8x24xbf16, #tpu.memory_space<vmem>>, vector<1x8x24xbf16>
    %225 = vector.shape_cast %224 : vector<1x8x24xbf16> to vector<8x24xbf16>
    %226 = arith.truncf %223 : vector<24x384xf32> to vector<24x384xbf16>
    %cst_129 = arith.constant dense<0.000000e+00> : vector<8x384xf32>
    %227 = tpu.matmul %225, %226, %cst_129 {dimension_numbers = #tpu.dot_dimension_numbers<[1], [0], [0], [1], [0, 0, 1, 1], [], []>} : vector<8x24xbf16>, vector<24x384xbf16>, vector<8x384xf32> -> vector<8x384xf32>
    %228 = arith.addf %220, %227 : vector<8x384xf32>
    %c367_i32_130 = arith.constant 367 : i32
    %229 = tpu.dynamic_rotate %212 by %c367_i32_130 dim 1 : vector<8x384xf32>, i32 -> vector<8x384xf32>
    %c366_i32_131 = arith.constant 366 : i32
    %230 = tpu.dynamic_rotate %212 by %c366_i32_131 dim 1 : vector<8x384xf32>, i32 -> vector<8x384xf32>
    %c365_i32_132 = arith.constant 365 : i32
    %231 = tpu.dynamic_rotate %212 by %c365_i32_132 dim 1 : vector<8x384xf32>, i32 -> vector<8x384xf32>
    %232 = tpu.concatenate %229, %230, %231 in 0 : vector<8x384xf32>, vector<8x384xf32>, vector<8x384xf32> -> vector<24x384xf32>
    %c2_133 = arith.constant 2 : index
    %c0_134 = arith.constant 0 : index
    %c0_135 = arith.constant 0 : index
    %233 = vector.load %arg7[%c2_133, %c0_134, %c0_135] : memref<3x8x24xbf16, #tpu.memory_space<vmem>>, vector<1x8x24xbf16>
    %234 = vector.shape_cast %233 : vector<1x8x24xbf16> to vector<8x24xbf16>
    %235 = arith.truncf %232 : vector<24x384xf32> to vector<24x384xbf16>
    %cst_136 = arith.constant dense<0.000000e+00> : vector<8x384xf32>
    %236 = tpu.matmul %234, %235, %cst_136 {dimension_numbers = #tpu.dot_dimension_numbers<[1], [0], [0], [1], [0, 0, 1, 1], [], []>} : vector<8x24xbf16>, vector<24x384xbf16>, vector<8x384xf32> -> vector<8x384xf32>
    %237 = arith.addf %228, %236 : vector<8x384xf32>
    %c0_137 = arith.constant 0 : index
    %c0_138 = arith.constant 0 : index
    %238 = vector.load %arg8[%c0_137, %c0_138] : memref<8x1xf32, #tpu.memory_space<vmem>>, vector<8x1xf32>
    %239 = vector.broadcast %238 : vector<8x1xf32> to vector<8x384xf32>
    %240 = arith.addf %237, %239 : vector<8x384xf32>
    %241 = vector.broadcast %0 : vector<1x384xf32> to vector<8x384xf32>
    %242 = arith.mulf %240, %241 : vector<8x384xf32>
    %243 = vector.shape_cast %242 : vector<8x384xf32> to vector<1x8x384xf32>
    %cst_139 = arith.constant dense<0.000000e+00> : vector<1xf32>
    %244 = vector.multi_reduction <add>, %243, %cst_139 [1, 2] : vector<1x8x384xf32> to vector<1xf32>
    %245 = vector.shape_cast %244 : vector<1xf32> to vector<1x1x1xf32>
    %246 = vector.extract %245[0, 0, 0] : f32 from vector<1x1x1xf32>
    %cst_140 = arith.constant 4.8828125E-4 : f32
    %247 = arith.mulf %246, %cst_140 : f32
    %248 = vector.broadcast %247 : f32 to vector<8x384xf32>
    %249 = arith.subf %242, %248 : vector<8x384xf32>
    %250 = vector.broadcast %0 : vector<1x384xf32> to vector<8x384xf32>
    %251 = arith.mulf %249, %250 : vector<8x384xf32>
    %252 = arith.mulf %251, %251 : vector<8x384xf32>
    %253 = vector.shape_cast %252 : vector<8x384xf32> to vector<1x8x384xf32>
    %cst_141 = arith.constant dense<0.000000e+00> : vector<1xf32>
    %254 = vector.multi_reduction <add>, %253, %cst_141 [1, 2] : vector<1x8x384xf32> to vector<1xf32>
    %255 = vector.shape_cast %254 : vector<1xf32> to vector<1x1x1xf32>
    %256 = vector.extract %255[0, 0, 0] : f32 from vector<1x1x1xf32>
    %cst_142 = arith.constant 4.8828125E-4 : f32
    %257 = arith.mulf %256, %cst_142 : f32
    %cst_143 = arith.constant 9.99999974E-6 : f32
    %258 = arith.addf %257, %cst_143 : f32
    %259 = math.rsqrt %258 : f32
    %c0_144 = arith.constant 0 : index
    %c0_145 = arith.constant 0 : index
    %260 = vector.load %arg9[%c0_144, %c0_145] : memref<8x1xf32, #tpu.memory_space<vmem>>, vector<8x1xf32>
    %261 = vector.broadcast %259 : f32 to vector<8x1xf32>
    %262 = arith.mulf %261, %260 : vector<8x1xf32>
    %263 = vector.broadcast %262 : vector<8x1xf32> to vector<8x384xf32>
    %264 = arith.mulf %251, %263 : vector<8x384xf32>
    %c0_146 = arith.constant 0 : index
    %c0_147 = arith.constant 0 : index
    %265 = vector.load %arg10[%c0_146, %c0_147] : memref<8x1xf32, #tpu.memory_space<vmem>>, vector<8x1xf32>
    %266 = vector.broadcast %265 : vector<8x1xf32> to vector<8x384xf32>
    %267 = arith.addf %264, %266 : vector<8x384xf32>
    %cst_148 = arith.constant 0.000000e+00 : f32
    %268 = vector.broadcast %cst_148 : f32 to vector<8x384xf32>
    %269 = arith.maximumf %267, %268 : vector<8x384xf32>
    %270 = vector.broadcast %0 : vector<1x384xf32> to vector<8x384xf32>
    %271 = arith.mulf %269, %270 : vector<8x384xf32>
    %c19_i32_149 = arith.constant 19 : i32
    %272 = tpu.dynamic_rotate %271 by %c19_i32_149 dim 1 : vector<8x384xf32>, i32 -> vector<8x384xf32>
    %c18_i32_150 = arith.constant 18 : i32
    %273 = tpu.dynamic_rotate %271 by %c18_i32_150 dim 1 : vector<8x384xf32>, i32 -> vector<8x384xf32>
    %c17_i32_151 = arith.constant 17 : i32
    %274 = tpu.dynamic_rotate %271 by %c17_i32_151 dim 1 : vector<8x384xf32>, i32 -> vector<8x384xf32>
    %275 = tpu.concatenate %272, %273, %274 in 0 : vector<8x384xf32>, vector<8x384xf32>, vector<8x384xf32> -> vector<24x384xf32>
    %c0_152 = arith.constant 0 : index
    %c0_153 = arith.constant 0 : index
    %c0_154 = arith.constant 0 : index
    %276 = vector.load %arg11[%c0_152, %c0_153, %c0_154] : memref<3x8x24xbf16, #tpu.memory_space<vmem>>, vector<1x8x24xbf16>
    %277 = vector.shape_cast %276 : vector<1x8x24xbf16> to vector<8x24xbf16>
    %278 = arith.truncf %275 : vector<24x384xf32> to vector<24x384xbf16>
    %cst_155 = arith.constant dense<0.000000e+00> : vector<8x384xf32>
    %279 = tpu.matmul %277, %278, %cst_155 {dimension_numbers = #tpu.dot_dimension_numbers<[1], [0], [0], [1], [0, 0, 1, 1], [], []>} : vector<8x24xbf16>, vector<24x384xbf16>, vector<8x384xf32> -> vector<8x384xf32>
    %c1_i32_156 = arith.constant 1 : i32
    %280 = tpu.dynamic_rotate %271 by %c1_i32_156 dim 1 : vector<8x384xf32>, i32 -> vector<8x384xf32>
    %c383_i32_157 = arith.constant 383 : i32
    %281 = tpu.dynamic_rotate %271 by %c383_i32_157 dim 1 : vector<8x384xf32>, i32 -> vector<8x384xf32>
    %282 = tpu.concatenate %280, %271, %281 in 0 : vector<8x384xf32>, vector<8x384xf32>, vector<8x384xf32> -> vector<24x384xf32>
    %c1_158 = arith.constant 1 : index
    %c0_159 = arith.constant 0 : index
    %c0_160 = arith.constant 0 : index
    %283 = vector.load %arg11[%c1_158, %c0_159, %c0_160] : memref<3x8x24xbf16, #tpu.memory_space<vmem>>, vector<1x8x24xbf16>
    %284 = vector.shape_cast %283 : vector<1x8x24xbf16> to vector<8x24xbf16>
    %285 = arith.truncf %282 : vector<24x384xf32> to vector<24x384xbf16>
    %cst_161 = arith.constant dense<0.000000e+00> : vector<8x384xf32>
    %286 = tpu.matmul %284, %285, %cst_161 {dimension_numbers = #tpu.dot_dimension_numbers<[1], [0], [0], [1], [0, 0, 1, 1], [], []>} : vector<8x24xbf16>, vector<24x384xbf16>, vector<8x384xf32> -> vector<8x384xf32>
    %287 = arith.addf %279, %286 : vector<8x384xf32>
    %c367_i32_162 = arith.constant 367 : i32
    %288 = tpu.dynamic_rotate %271 by %c367_i32_162 dim 1 : vector<8x384xf32>, i32 -> vector<8x384xf32>
    %c366_i32_163 = arith.constant 366 : i32
    %289 = tpu.dynamic_rotate %271 by %c366_i32_163 dim 1 : vector<8x384xf32>, i32 -> vector<8x384xf32>
    %c365_i32_164 = arith.constant 365 : i32
    %290 = tpu.dynamic_rotate %271 by %c365_i32_164 dim 1 : vector<8x384xf32>, i32 -> vector<8x384xf32>
    %291 = tpu.concatenate %288, %289, %290 in 0 : vector<8x384xf32>, vector<8x384xf32>, vector<8x384xf32> -> vector<24x384xf32>
    %c2_165 = arith.constant 2 : index
    %c0_166 = arith.constant 0 : index
    %c0_167 = arith.constant 0 : index
    %292 = vector.load %arg11[%c2_165, %c0_166, %c0_167] : memref<3x8x24xbf16, #tpu.memory_space<vmem>>, vector<1x8x24xbf16>
    %293 = vector.shape_cast %292 : vector<1x8x24xbf16> to vector<8x24xbf16>
    %294 = arith.truncf %291 : vector<24x384xf32> to vector<24x384xbf16>
    %cst_168 = arith.constant dense<0.000000e+00> : vector<8x384xf32>
    %295 = tpu.matmul %293, %294, %cst_168 {dimension_numbers = #tpu.dot_dimension_numbers<[1], [0], [0], [1], [0, 0, 1, 1], [], []>} : vector<8x24xbf16>, vector<24x384xbf16>, vector<8x384xf32> -> vector<8x384xf32>
    %296 = arith.addf %287, %295 : vector<8x384xf32>
    %c0_169 = arith.constant 0 : index
    %c0_170 = arith.constant 0 : index
    %297 = vector.load %arg12[%c0_169, %c0_170] : memref<8x1xf32, #tpu.memory_space<vmem>>, vector<8x1xf32>
    %298 = vector.broadcast %297 : vector<8x1xf32> to vector<8x384xf32>
    %299 = arith.addf %296, %298 : vector<8x384xf32>
    %c1_171 = arith.constant 1 : index
    %c0_172 = arith.constant 0 : index
    %c0_173 = arith.constant 0 : index
    %300 = vector.load %arg13[%c1_171, %c0_172, %c0_173] : memref<2x8x384xf32, #tpu.memory_space<vmem>>, vector<1x8x384xf32>
    %301 = vector.shape_cast %300 : vector<1x8x384xf32> to vector<8x384xf32>
    %302 = vector.shape_cast %299 : vector<8x384xf32> to vector<1x8x384xf32>
    tpu.vector_store %arg13[%c1_171, %c0_172, %c0_173], %302 {strides = array<i32>} : memref<2x8x384xf32, #tpu.memory_space<vmem>>, vector<1x8x384xf32>,
    return
  }
  func.func @transform_0(%arg0: i32) -> (i32, i32, i32) {
    %c0_i32 = arith.constant 0 : i32
    %c0_i32_0 = arith.constant 0 : i32
    %c0_i32_1 = arith.constant 0 : i32
    return %arg0, %c0_i32, %c0_i32_0 : i32, i32, i32
  }
  func.func @transform_1(%arg0: i32) -> (i32, i32) {
    %c0_i32 = arith.constant 0 : i32
    %c0_i32_0 = arith.constant 0 : i32
    %c0_i32_1 = arith.constant 0 : i32
    return %c0_i32, %c0_i32_0 : i32, i32
  }
  func.func @transform_2(%arg0: i32) -> (i32, i32, i32) {
    %c0_i32 = arith.constant 0 : i32
    %c0_i32_0 = arith.constant 0 : i32
    %c0_i32_1 = arith.constant 0 : i32
    %c0_i32_2 = arith.constant 0 : i32
    return %c0_i32, %c0_i32_0, %c0_i32_1 : i32, i32, i32
  }
  func.func @transform_3(%arg0: i32) -> (i32, i32) {
    %c0_i32 = arith.constant 0 : i32
    %c0_i32_0 = arith.constant 0 : i32
    %c0_i32_1 = arith.constant 0 : i32
    return %c0_i32, %c0_i32_0 : i32, i32
  }
  func.func @transform_4(%arg0: i32) -> (i32, i32) {
    %c0_i32 = arith.constant 0 : i32
    %c0_i32_0 = arith.constant 0 : i32
    %c0_i32_1 = arith.constant 0 : i32
    return %c0_i32, %c0_i32_0 : i32, i32
  }
  func.func @transform_5(%arg0: i32) -> (i32, i32) {
    %c0_i32 = arith.constant 0 : i32
    %c0_i32_0 = arith.constant 0 : i32
    %c0_i32_1 = arith.constant 0 : i32
    return %c0_i32, %c0_i32_0 : i32, i32
  }
  func.func @transform_6(%arg0: i32) -> (i32, i32, i32) {
    %c0_i32 = arith.constant 0 : i32
    %c0_i32_0 = arith.constant 0 : i32
    %c0_i32_1 = arith.constant 0 : i32
    %c0_i32_2 = arith.constant 0 : i32
    return %c0_i32, %c0_i32_0, %c0_i32_1 : i32, i32, i32
  }
  func.func @transform_7(%arg0: i32) -> (i32, i32) {
    %c0_i32 = arith.constant 0 : i32
    %c0_i32_0 = arith.constant 0 : i32
    %c0_i32_1 = arith.constant 0 : i32
    return %c0_i32, %c0_i32_0 : i32, i32
  }
  func.func @transform_8(%arg0: i32) -> (i32, i32) {
    %c0_i32 = arith.constant 0 : i32
    %c0_i32_0 = arith.constant 0 : i32
    %c0_i32_1 = arith.constant 0 : i32
    return %c0_i32, %c0_i32_0 : i32, i32
  }
  func.func @transform_9(%arg0: i32) -> (i32, i32) {
    %c0_i32 = arith.constant 0 : i32
    %c0_i32_0 = arith.constant 0 : i32
    %c0_i32_1 = arith.constant 0 : i32
    return %c0_i32, %c0_i32_0 : i32, i32
  }
  func.func @transform_10(%arg0: i32) -> (i32, i32, i32) {
    %c0_i32 = arith.constant 0 : i32
    %c0_i32_0 = arith.constant 0 : i32
    %c0_i32_1 = arith.constant 0 : i32
    %c0_i32_2 = arith.constant 0 : i32
    return %c0_i32, %c0_i32_0, %c0_i32_1 : i32, i32, i32
  }
  func.func @transform_11(%arg0: i32) -> (i32, i32) {
    %c0_i32 = arith.constant 0 : i32
    %c0_i32_0 = arith.constant 0 : i32
    %c0_i32_1 = arith.constant 0 : i32
    return %c0_i32, %c0_i32_0 : i32, i32
  }
  func.func @transform_12(%arg0: i32) -> (i32, i32, i32) {
    %c0_i32 = arith.constant 0 : i32
    %c0_i32_0 = arith.constant 0 : i32
    %c0_i32_1 = arith.constant 0 : i32
    return %arg0, %c0_i32, %c0_i32_0 : i32, i32, i32
  }
}

</mosaic_0001>

<bundles_post_ra>
// kernel: tpu_custom_call.1
= control target key start
LH: loop header
LB: loop body
LE: loop exit
PB: predicated region body
PF: predicated region fallthrough
CT: control target
= control target key end

     0   :  { %17 = vsyncpa [#allocation3], 0  ;;  %s4195_s0 = inlined_call_operand.vmem [shape: f32[2,8,384], index: 0, kind: input, shape index: {}]   ;;  %s4196_s1 = inlined_call_operand.hbm [shape: f32[1,384], index: 1, kind: input, shape index: {}]   ;;  %s4197_s2 = inlined_call_operand.vmem [shape: bf16[3,8,24], index: 2, kind: input, shape index: {}]   ;;  %s4198_s3 = inlined_call_operand.vmem [shape: f32[8,1], index: 3, kind: input, shape index: {}]   ;;  %s4199_s4 = inlined_call_operand.vmem [shape: f32[8,1], index: 4, kind: input, shape index: {}]   ;;  %s4200_s5 = inlined_call_operand.vmem [shape: f32[8,1], index: 5, kind: input, shape index: {}]   ;;  %s4201_s6 = inlined_call_operand.vmem [shape: bf16[3,8,24], index: 6, kind: input, shape index: {}]   ;;  %s4202_s7 = inlined_call_operand.vmem [shape: f32[8,1], index: 7, kind: input, shape index: {}]   ;;  %s4203_s8 = inlined_call_operand.vmem [shape: f32[8,1], index: 8, kind: input, shape index: {}]   ;;  %s4204_s9 = inlined_call_operand.vmem [shape: f32[8,1], index: 9, kind: input, shape index: {}]   ;;  %s4205_s10 = inlined_call_operand.vmem [shape: bf16[3,8,24], index: 10, kind: input, shape index: {}]   ;;  %s4206_s11 = inlined_call_operand.vmem [shape: f32[8,1], index: 11, kind: input, shape index: {}]   ;;  %s4207_s12 = inlined_call_operand.hbm [shape: f32[2,8,384], index: 12, kind: output, shape index: {}]  }
   0x1   :  { %18 = vsyncpa [#allocation4], 0  ;;  %s3313_s21 = smov [#allocation2]   ;;  %s3265_s25 = scalar_lea.hbm %s4196_s1, 48 }
   0x2   :  { %s27_s22 = sshll.u32 %s3313_s21, 4  ;;  %p3266_p0 = scmp.ne.s32.totalorder %s4196_s1, %s3265_s25  ;;  %s28_s22 = int_to_ptr.vmem [resolvable:$true] %s27_s22 }
   0x3   :  { %p3269_p1 = scmp.lt.u32.totalorder %s3265_s25, %s4196_s1 }
   0x5   :  { %p3271_p2 = pnand %p3269_p1, %p3266_p0 }
   0x7   :  { %3274 = shalt.err (!%p3271_p2)
}
   0x8   :  { %s3275_s30 = scalar_lea.vmem %s28_s22, 48  ;;  %s3279_s13 = scalar_lea.vmem %s28_s22, 64 }
   0x9   :  { %p3276_p3 = scmp.ne.s32.totalorder %s28_s22, %s3275_s30  ;;  %p3280_p4 = scmp.lt.s32.totalorder %s28_s22, %s28_s22 }
   0xa   :  { %p3281_p5 = scmp.lt.s32.totalorder %s3279_s13, %s3275_s30 }
   0xc   :  { %p3282_p6 = por %p3281_p5, %p3280_p4 }
   0xe   :  { %p3283_p7 = pnand %p3282_p6, %p3276_p3 }
  0x10   :  { %3286 = shalt.err (!%p3283_p7)
}
  0x11   :  { %30 = dma.hbm_to_vmem [thread:$0]  %s4196_s1, 48, %s28_s22, [#allocation3]  }
  0x12   :  { %3309 = dma.done.wait [#allocation3], 48  }
  0x13   :  { %3310 = vsyncadd [#allocation3], 4294967248  ;;  %v3314_v0 = vmov 0.0   ;;  %v3409_v1 = vld [vmem:[%s4195_s0] sm:$0xff]  ;;  %v57_v2 = vld [vmem:[%s4195_s0 + $0x8] sm:$0xff]  ;;  %s3315_s20 = smov 127   ;;  %v65_v8 = vlaneseq }
  0x14   :  { %2816 = vmatprep.subr.bf16.mxu1 %v3314_v0  ;;  %v3004_v3 = vpack.i.bf16 %v57_v2, %v3409_v1  ;;  %s3316_s1 = smov 1   ;;  %v58_v4 = vld [vmem:[%s4195_s0 + $0x10] sm:$0xff]  ;;  %v3317_v5 = vmov 0   ;;  %vm3318_vm0 = vmmov 0   ;;  %s3319_s23 = smov 18   ;;  %v448_v7 = vld [vmem:[%s4198_s3] sm:$0xff] }
  0x15   :  { %172 = vmatprep.mubr.bf16.mxu0 %v3317_v5  ;;  %2820 = vmatprep.mubr.msk.bf16.mxu1 %vm3318_vm0, %v3314_v0  ;;  %s3320_s24 = smov 19   ;;  %s3321_s25 = smov 17   ;;  %v3029_v6 = vpack.i.bf16 %v58_v4, %v57_v2  ;;  %v3445_v9 = vand.u32 127, %v65_v8  ;;  %vm130_vm3 = vcmask 1043456   ;;  %v2693_v43 = vld [vmem:[%s4197_s2 + $0x4] sm:$0xf] }
  0x16   :  { %3005 = vrot.lane.b32.xlu1 %v3004_v3, %s3315_s20  ;;  %3000 = vrot.lane.b32.xlu0 %v3004_v3, %s3316_s1  ;;  %s3322_s26 = smov 110   ;;  %s3323_s27 = smov 111   ;;  %vm126_vm6 = vcmask 195584  }
  0x17   :  { %3039 = vset.pattern.permute.xlu0 %v3317_v5  ;;  %3040 = vset.pattern.permute.xlu1 %v3317_v5  ;;  %s3324_s28 = smov 109   ;;  %vm114_vm1 = vcmp.lt.s32.totalorder %v3445_v9, 127  ;;  %vm104_vm2 = vcmp.lt.s32.totalorder %v3445_v9, 1  ;;  %vm77_vm4 = vcmp.lt.s32.totalorder %v3445_v9, 18  ;;  %vm67_vm5 = vcmp.lt.s32.totalorder %v3445_v9, 19 }
  0x18   :  { %vm87_vm7 = vcmp.lt.s32.totalorder %v3445_v9, 17  ;;  %vm330_vm8 = vcmp.lt.s32.totalorder %v3445_v9, 110  ;;  %vm320_vm9 = vcmp.lt.s32.totalorder %v3445_v9, 111  ;;  %vm340_vm10 = vcmp.lt.s32.totalorder %v3445_v9, 109 }
  0x1a   :  { %112 = vrot.lane.b32.xlu1 %v58_v4, %s3315_s20  ;;  %102 = vrot.lane.b32.xlu0 %v58_v4, %s3316_s1 }
  0x1e   :  { %3015 = vrot.lane.b32.xlu1 %v3004_v3, %s3319_s23  ;;  %3010 = vrot.lane.b32.xlu0 %v3004_v3, %s3320_s24 }
  0x22   :  { %75 = vrot.lane.b32.xlu1 %v58_v4, %s3319_s23  ;;  %63 = vrot.lane.b32.xlu0 %v58_v4, %s3320_s24 }
  0x26   :  { %85 = vrot.lane.b32.xlu1 %v58_v4, %s3321_s25  ;;  %3020 = vrot.lane.b32.xlu0 %v3004_v3, %s3321_s25 }
  0x2a   :  { %3030 = vrot.lane.b32.xlu1 %v3029_v6, %s3322_s26  ;;  %3025 = vrot.lane.b32.xlu0 %v3029_v6, %s3323_s27  ;;  %v91_v6 = vld [vmem:[%s4197_s2] sm:$0xf] }
  0x2e   :  { %324 = vrot.lane.b32.xlu1 %v3409_v1, %s3322_s26  ;;  %314 = vrot.lane.b32.xlu0 %v3409_v1, %s3323_s27 }
  0x32   :  { %3035 = vrot.lane.b32.xlu0 %v3004_v3, %s3324_s28  ;;  %338 = vrot.lane.b32.xlu1 %v58_v4, %s3324_s28 }
  0x36   :  { %451 = vperm.xlu0 %3039, %v448_v7  }
  0x88   :  { %v3006_v10 = vpop.permute.xlu1 %3005  ;;  %v3001_v11 = vpop.permute.xlu0 %3000 }
  0x89   :  { %v3008_v12 = vunpack.i.h.bf16 %v3006_v10  ;;  %v3007_v13 = vunpack.i.l.bf16 %v3006_v10  ;;  %v3003_v14 = vunpack.i.h.bf16 %v3001_v11  ;;  %v3002_v15 = vunpack.i.l.bf16 %v3001_v11 }
  0x8b   :  { %v106_v16 = vsel %vm104_vm2, %v3002_v15, %v3003_v14  ;;  %v116_v20 = vsel %vm114_vm1, %v3007_v13, %v3008_v12 }
  0x8c   :  { %v113_v17 = vpop.permute.xlu1 %112  ;;  %v103_v18 = vpop.permute.xlu0 %102  ;;  %v121_v19 = vpack.c.bf16 %v57_v2, %v106_v16  ;;  %v123_v28 = vpack.c.bf16 %v116_v20, %v116_v20 }
  0x8d   :  { %v115_v21 = vsel %vm114_vm1, %v3008_v12, %v113_v17  ;;  %v117_v22 = vsel %vm114_vm1, %v113_v17, %v3007_v13  ;;  %v107_v23 = vsel %vm104_vm2, %v103_v18, %v3002_v15  ;;  %v105_v24 = vsel %vm104_vm2, %v3003_v14, %v103_v18 }
  0x8e   :  { %v124_v25 = vpack.c.bf16 %v115_v21, %v115_v21  ;;  %140 = vmatprep.subr.bf16.mxu0 %v121_v19  ;;  %v120_v26 = vpack.c.bf16 %v3409_v1, %v107_v23  ;;  %v122_v27 = vpack.c.bf16 %v58_v4, %v105_v24  ;;  %v125_v29 = vpack.c.bf16 %v117_v22, %v117_v22 }
  0x8f   :  { %v132_v36 = vsel %vm130_vm3, %v123_v28, 0 }
  0x90   :  { %v3016_v30 = vpop.permute.xlu1 %3015  ;;  %v3011_v31 = vpop.permute.xlu0 %3010  ;;  %141 = vmatpush1.bf16.msra.mxu0 %v120_v26  ;;  %2817 = vmatpush3.bf16.msra.mxu1 %v122_v27  ;;  %v138_v37 = vsel %vm130_vm3, %v125_v29, 0 }
  0x91   :  { %v3018_v32 = vunpack.i.h.bf16 %v3016_v30  ;;  %v3017_v33 = vunpack.i.l.bf16 %v3016_v30  ;;  %v3013_v34 = vunpack.i.h.bf16 %v3011_v31  ;;  %v3012_v35 = vunpack.i.l.bf16 %v3011_v31  ;;  %2694 = vmatprep.subr.msk.bf16.mxu0 %vm130_vm3, %v124_v25  ;;  %2818 = vmatprep.subr.bf16.mxu1 %v3314_v0 }
  0x93   :  { %v69_v38 = vsel %vm67_vm5, %v3012_v35, %v3013_v34  ;;  %v79_v39 = vsel %vm77_vm4, %v3017_v33, %v3018_v32 }
  0x94   :  { %v76_v40 = vpop.permute.xlu1 %75  ;;  %v64_v41 = vpop.permute.xlu0 %63  ;;  %143 = vmatpush1.bf16.msra.mxu0 %v132_v36  ;;  %2819 = vmatpush3.bf16.msra.mxu1 %v138_v37  ;;  %v93_v42 = vpack.c.bf16 %v79_v39, %v69_v38 }
  0x95   :  { %v78_v44 = vsel %vm77_vm4, %v3018_v32, %v76_v40  ;;  %v80_v45 = vsel %vm77_vm4, %v76_v40, %v3017_v33  ;;  %v68_v46 = vsel %vm67_vm5, %v3013_v34, %v64_v41  ;;  %v70_v47 = vsel %vm67_vm5, %v64_v41, %v3012_v35  ;;  %2824 = vmatprep.subr.bf16.mxu1 %v3314_v0  ;;  %v2700_v32 = vld [vmem:[%s4197_s2 + $0x8] sm:$0xf] }
  0x96   :  { %v92_v48 = vpack.c.bf16 %v80_v45, %v70_v47  ;;  %v94_v49 = vpack.c.bf16 %v78_v44, %v68_v46  ;;  %233 = vmatprep.subr.bf16.mxu0 %v93_v42 }
  0x97   :  { %2695 = vmatmul.mubr.msk.bf16.vlgmr.msra.gmra.mrb[0].mxu0 %vm126_vm6, %v2693_v43  ;;  %2821 = vmatmul.mubr.msk.bf16.vlgmr.msra.gmra.mrb[0].mxu1 %vm126_vm6, %v2693_v43 }
  0x98   :  { %v86_v50 = vpop.permute.xlu1 %85  ;;  %v3021_v51 = vpop.permute.xlu0 %3020  ;;  %234 = vmatpush1.bf16.msra.mxu0 %v92_v48  ;;  %2825 = vmatpush3.bf16.msra.mxu1 %v94_v49 }
  0x99   :  { %v3023_v52 = vunpack.i.h.bf16 %v3021_v51  ;;  %v3022_v53 = vunpack.i.l.bf16 %v3021_v51  ;;  %2826 = vmatprep.subr.bf16.mxu1 %v3314_v0  ;;  %265 = vmatprep.mubr.bf16.mxu0 %v3317_v5 }
  0x9a   :  { %2828 = vmatprep.mubr.msk.bf16.mxu1 %vm3318_vm0, %v3314_v0 }
  0x9b   :  { %v89_v54 = vsel %vm87_vm7, %v3022_v53, %v3023_v52  ;;  %v90_v55 = vsel %vm87_vm7, %v86_v50, %v3022_v53  ;;  %v88_v56 = vsel %vm87_vm7, %v3023_v52, %v86_v50  ;;  %v459_v52 = vshrl.u32 %v65_v8, 7 }
  0x9c   :  { %v3031_v57 = vpop.permute.xlu1 %3030  ;;  %v3026_v58 = vpop.permute.xlu0 %3025  ;;  %v96_v59 = vpack.c.bf16 %v89_v54, %v89_v54  ;;  %v95_v60 = vpack.c.bf16 %v90_v55, %v90_v55  ;;  %v97_v61 = vpack.c.bf16 %v88_v56, %v88_v56  ;;  %v55_v54 = vld [vmem:[#allocation2] sm:$0x7] }
  0x9d   :  { %v3033_v62 = vunpack.i.h.bf16 %v3031_v57  ;;  %v3032_v63 = vunpack.i.l.bf16 %v3031_v57  ;;  %v3028_v1 = vunpack.i.h.bf16 %v3026_v58  ;;  %v3027_v2 = vunpack.i.l.bf16 %v3026_v58 }
  0x9e   :  { %2697 = vmatprep.subr.msk.bf16.mxu0 %vm130_vm3, %v96_v59  ;;  %v225_v3 = vsel %vm130_vm3, %v95_v60, 0  ;;  %v231_v4 = vsel %vm130_vm3, %v97_v61, 0  ;;  %v460_v53 = vsub.s32 0, %v459_v52  ;;  %v464_v55 = vsub.s32 1, %v459_v52 }
  0x9f   :  { %236 = vmatpush1.bf16.msra.mxu0 %v225_v3  ;;  %2827 = vmatpush3.bf16.msra.mxu1 %v231_v4  ;;  %v321_v7 = vsel %vm320_vm9, %v3027_v2, %v3028_v1  ;;  %v331_v10 = vsel %vm330_vm8, %v3032_v63, %v3033_v62  ;;  %v468_v59 = vsub.s32 2, %v459_v52 }
  0xa0   :  { %v325_v11 = vpop.permute.xlu1 %324  ;;  %v315_v12 = vpop.permute.xlu0 %314  ;;  %v347_v13 = vpack.c.bf16 %v331_v10, %v321_v7  ;;  %2832 = vmatprep.subr.bf16.mxu1 %v3314_v0 }
  0xa1   :  { %v332_v14 = vsel %vm330_vm8, %v325_v11, %v3032_v63  ;;  %v333_v15 = vsel %vm330_vm8, %v3033_v62, %v325_v11  ;;  %v322_v16 = vsel %vm320_vm9, %v315_v12, %v3027_v2  ;;  %v323_v17 = vsel %vm320_vm9, %v3028_v1, %v315_v12 }
  0xa2   :  { %v346_v18 = vpack.c.bf16 %v332_v14, %v322_v16  ;;  %v348_v19 = vpack.c.bf16 %v333_v15, %v323_v17  ;;  %2698 = vmatmul.mubr.msk.bf16.vlgmr.msra.gmra.mrb[4].mxu0 %vm126_vm6, %v91_v6  ;;  %2829 = vmatmul.mubr.msk.bf16.vlgmr.msra.gmra.mrb[4].mxu1 %vm126_vm6, %v91_v6  ;;  %v3544_v1 = vrot.slane %v55_v54, %v460_v53 }
  0xa3   :  { %364 = vmatprep.subr.bf16.mxu0 %v347_v13  ;;  %396 = vmatprep.mubr.bf16.mxu0 %v3317_v5  ;;  %v3546_v6 = vrot.slane %v55_v54, %v464_v55  ;;  %v3548_v13 = vrot.slane %v55_v54, %v468_v59 }
  0xa4   :  { %v3036_v20 = vpop.permute.xlu0 %3035  ;;  %365 = vmatpush1.bf16.msra.mxu0 %v346_v18  ;;  %2833 = vmatpush3.bf16.msra.mxu1 %v348_v19  ;;  %v339_v21 = vpop.permute.xlu1 %338 }
  0xa5   :  { %v3038_v22 = vunpack.i.h.bf16 %v3036_v20  ;;  %v3037_v23 = vunpack.i.l.bf16 %v3036_v20  ;;  %2834 = vmatprep.subr.bf16.mxu1 %v3314_v0  ;;  %2836 = vmatprep.mubr.msk.bf16.mxu1 %vm3318_vm0, %v3314_v0 }
  0xa7   :  { %v341_v24 = vsel %vm340_vm10, %v3038_v22, %v339_v21  ;;  %v343_v25 = vsel %vm340_vm10, %v339_v21, %v3037_v23  ;;  %v342_v26 = vsel %vm340_vm10, %v3037_v23, %v3038_v22 }
  0xa8   :  { %v350_v27 = vpack.c.bf16 %v341_v24, %v341_v24  ;;  %v351_v28 = vpack.c.bf16 %v343_v25, %v343_v25  ;;  %v349_v29 = vpack.c.bf16 %v342_v26, %v342_v26 }
  0xaa   :  { %2701 = vmatprep.subr.msk.bf16.mxu0 %vm130_vm3, %v350_v27  ;;  %v356_v30 = vsel %vm130_vm3, %v349_v29, 0  ;;  %v362_v31 = vsel %vm130_vm3, %v351_v28, 0 }
  0xab   :  { %367 = vmatpush1.bf16.msra.mxu0 %v356_v30  ;;  %2835 = vmatpush3.bf16.msra.mxu1 %v362_v31 }
  0xac   :  { %2840 = vmatprep.subr.bf16.mxu1 %v3314_v0 }
  0xae   :  { %2702 = vmatmul.mubr.msk.bf16.vlgmr.msra.gmra.mrb[8].mxu0 %vm126_vm6, %v2700_v32  ;;  %2837 = vmatmul.mubr.msk.bf16.vlgmr.msra.gmra.mrb[8].mxu1 %vm126_vm6, %v2700_v32 }
  0xaf   :  { %644 = vmatprep.mubr.bf16.mxu0 %v3317_v5  ;;  %2844 = vmatprep.mubr.msk.bf16.mxu1 %vm3318_vm0, %v3314_v0 }
  0xb5   :  { %v452_v56 = vpop.permute.xlu0 %451 }
 0x16a   :  { %v174_v33 = vpop.f32.mrb[0].mxu0  ;;  %v215_v34 = vpop.f32.mrb[0].mxu1 }
 0x16b   :  { %v176_v35 = vpop.f32.mrb[1].mxu0  ;;  %v2822_v36 = vpop.f32.mrb[1].mxu1 }
 0x16c   :  { %v178_v37 = vpop.f32.mrb[2].mxu0  ;;  %v218_v38 = vpop.f32.mrb[2].mxu1 }
 0x16d   :  { %v179_v39 = vpop.f32.mrb[3].mxu0  ;;  %v2823_v40 = vpop.f32.mrb[3].mxu1  ;;  %v525_v38 = vld [vmem:[%s4200_s5] sm:$0xff] }
 0x175   :  { %v267_v41 = vpop.f32.mrb[4].mxu0  ;;  %v308_v42 = vpop.f32.mrb[4].mxu1 }
 0x176   :  { %v268_v43 = vadd.f32 %v267_v41, %v174_v33  ;;  %v309_v44 = vadd.f32 %v308_v42, %v215_v34  ;;  %v269_v45 = vpop.f32.mrb[5].mxu0  ;;  %v2830_v46 = vpop.f32.mrb[5].mxu1 }
 0x177   :  { %v270_v47 = vadd.f32 %v269_v45, %v176_v35  ;;  %v271_v48 = vpop.f32.mrb[6].mxu0  ;;  %v311_v49 = vpop.f32.mrb[6].mxu1 }
 0x178   :  { %v272_v50 = vpop.f32.mrb[7].mxu0  ;;  %v2831_v51 = vpop.f32.mrb[7].mxu1  ;;  %v514_v48 = vld [vmem:[%s4199_s4] sm:$0xff] }
 0x181   :  { %v398_v57 = vpop.f32.mrb[8].mxu0  ;;  %v439_v58 = vpop.f32.mrb[8].mxu1 }
 0x182   :  { %v445_v60 = vadd.f32 %v398_v57, %v268_v43  ;;  %v447_v61 = vadd.f32 %v439_v58, %v309_v44  ;;  %v400_v62 = vpop.f32.mrb[9].mxu0  ;;  %v2838_v63 = vpop.f32.mrb[9].mxu1 }
 0x183   :  { %v446_v2 = vadd.f32 %v400_v62, %v270_v47  ;;  %v402_v3 = vpop.f32.mrb[10].mxu0  ;;  %v442_v4 = vpop.f32.mrb[10].mxu1 }
 0x184   :  { %v454_v7 = vadd.f32 %v452_v56, %v445_v60  ;;  %v403_v8 = vpop.f32.mrb[11].mxu0  ;;  %v2839_v10 = vpop.f32.mrb[11].mxu1  ;;  %v456_v12 = vadd.f32 %v452_v56, %v447_v61 }
 0x185   :  { %v455_v11 = vadd.f32 %v452_v56, %v446_v2 }
 0x186   :  { %v473_v14 = vmul.f32 %v3544_v1, %v454_v7  ;;  %v475_v16 = vmul.f32 %v3548_v13, %v456_v12  ;;  %v917_v7 = vld [vmem:[%s4202_s7] sm:$0xff] }
 0x187   :  { %v474_v15 = vmul.f32 %v3546_v6, %v455_v11 }
 0x189   :  { %v476_v17 = vadd.f32 %v474_v15, %v473_v14 }
 0x18b   :  { %v477_v18 = vadd.f32 %v476_v17, %v475_v16 }
 0x18d   :  { %478 = vadd.xlane.f32.xlu1 %v477_v18 }
 0x21a   :  { %v479_v19 = vpop.xlane.xlu1 %478 }
 0x21b   :  { %v480_v20 = vrot.slane %v479_v19, 4 }
 0x21d   :  { %v481_v21 = vadd.f32 %v480_v20, %v479_v19 }
 0x21f   :  { %v482_v22 = vrot.slane %v481_v21, 2 }
 0x221   :  { %v483_v23 = vadd.f32 %v482_v22, %v481_v21 }
 0x223   :  { %v484_v24 = vrot.slane %v483_v23, 1 }
 0x225   :  { %v485_v25 = vadd.f32 %v484_v24, %v483_v23 }
 0x227   :  { %2960 = vpush %v485_v25 }
 0x258   :  { %s2961_s19 = spop %2960 }
 0x259   :  { %s487_s21 = smul.f32 0.00048828125, %s2961_s19 }
 0x25b   :  { %v488_v26 = vstv %s487_s21 }
 0x25c   :  { %v489_v27 = vsub.f32 %v473_v14, %v488_v26  ;;  %v490_v28 = vsub.f32 %v474_v15, %v488_v26  ;;  %v491_v29 = vsub.f32 %v475_v16, %v488_v26 }
 0x25e   :  { %v492_v30 = vmul.f32 %v489_v27, %v3544_v1  ;;  %v493_v31 = vmul.f32 %v490_v28, %v3546_v6  ;;  %v494_v32 = vmul.f32 %v491_v29, %v3548_v13 }
 0x260   :  { %v495_v33 = vmul.f32 %v492_v30, %v492_v30  ;;  %v496_v34 = vmul.f32 %v493_v31, %v493_v31  ;;  %v497_v35 = vmul.f32 %v494_v32, %v494_v32 }
 0x262   :  { %v498_v36 = vadd.f32 %v496_v34, %v495_v33 }
 0x264   :  { %v499_v37 = vadd.f32 %v498_v36, %v497_v35 }
 0x266   :  { %500 = vadd.xlane.f32.xlu0 %v499_v37 }
 0x27c   :  { %528 = vperm.xlu0 %3039, %v525_v38  }
 0x2f3   :  { %v501_v39 = vpop.xlane.xlu0 %500 }
 0x2f4   :  { %v502_v40 = vrot.slane %v501_v39, 4 }
 0x2f6   :  { %v503_v41 = vadd.f32 %v502_v40, %v501_v39 }
 0x2f8   :  { %v504_v42 = vrot.slane %v503_v41, 2 }
 0x2fa   :  { %v505_v43 = vadd.f32 %v504_v42, %v503_v41  ;;  %v2704_v42 = vld [vmem:[%s4201_s6 + $0x4] sm:$0xf] }
 0x2fb   :  { %v529_v55 = vpop.permute.xlu0 %528 }
 0x2fc   :  { %v506_v44 = vrot.slane %v505_v43, 1 }
 0x2fe   :  { %v507_v45 = vadd.f32 %v506_v44, %v505_v43 }
 0x300   :  { %2962 = vpush %v507_v45 }
 0x331   :  { %s2963_s30 = spop %2962 }
 0x332   :  { %s509_s13 = smul.f32 0.00048828125, %s2963_s30 }
 0x334   :  { %s510_s14 = sadd.f32 1e-05, %s509_s13 }
 0x336   :  { %v511_v46 = vstv %s510_s14 }
 0x337   :  { %3256 = vrsqrt.f32 %v511_v46 }
 0x341   :  { %v3257_v47 = vpop.eup %3256 }
 0x342   :  { %2964 = vpush %v3257_v47 }
 0x373   :  { %s2965_s17 = spop %2964 }
 0x374   :  { %v515_v49 = vstv %s2965_s17 }
 0x375   :  { %v516_v50 = vmul.f32 %v515_v49, %v514_v48 }
 0x377   :  { %519 = vperm.xlu1 %3040, %v516_v50  }
 0x3f6   :  { %v520_v51 = vpop.permute.xlu1 %519 }
 0x3f7   :  { %v522_v52 = vmul.f32 %v520_v51, %v492_v30  ;;  %v523_v53 = vmul.f32 %v520_v51, %v493_v31  ;;  %v524_v54 = vmul.f32 %v520_v51, %v494_v32 }
 0x3f9   :  { %v531_v56 = vadd.f32 %v529_v55, %v522_v52  ;;  %v532_v57 = vadd.f32 %v529_v55, %v523_v53  ;;  %v533_v58 = vadd.f32 %v529_v55, %v524_v54 }
 0x3fb   :  { %v534_v59 = vmax.f32 %v531_v56, 0.0  ;;  %v535_v60 = vmax.f32 %v532_v57, 0.0  ;;  %v536_v63 = vmax.f32 %v533_v58, 0.0 }
 0x3fd   :  { %v537_v61 = vmul.f32 %v534_v59, %v3544_v1  ;;  %v538_v62 = vmul.f32 %v535_v60, %v3546_v6  ;;  %v539_v3 = vmul.f32 %v536_v63, %v3548_v13 }
 0x3ff   :  { %v3046_v2 = vpack.i.bf16 %v538_v62, %v537_v61  ;;  %v3066_v4 = vpack.i.bf16 %v539_v3, %v538_v62 }
 0x401   :  { %3047 = vrot.lane.b32.xlu0 %v3046_v2, %s3315_s20  ;;  %3042 = vrot.lane.b32.xlu1 %v3046_v2, %s3316_s1 }
 0x405   :  { %3052 = vrot.lane.b32.xlu0 %v3046_v2, %s3320_s24  ;;  %578 = vrot.lane.b32.xlu1 %v539_v3, %s3316_s1 }
 0x409   :  { %544 = vrot.lane.b32.xlu0 %v539_v3, %s3320_s24  ;;  %587 = vrot.lane.b32.xlu1 %v539_v3, %s3315_s20 }
 0x40d   :  { %3062 = vrot.lane.b32.xlu0 %v3046_v2, %s3321_s25  ;;  %3057 = vrot.lane.b32.xlu1 %v3046_v2, %s3319_s23 }
 0x411   :  { %3067 = vrot.lane.b32.xlu0 %v3066_v4, %s3323_s27  ;;  %553 = vrot.lane.b32.xlu1 %v539_v3, %s3319_s23 }
 0x415   :  { %786 = vrot.lane.b32.xlu0 %v537_v61, %s3323_s27  ;;  %562 = vrot.lane.b32.xlu1 %v539_v3, %s3321_s25 }
 0x419   :  { %3077 = vrot.lane.b32.xlu0 %v3046_v2, %s3324_s28  ;;  %3072 = vrot.lane.b32.xlu1 %v3066_v4, %s3322_s26 }
 0x41d   :  { %920 = vperm.xlu0 %3039, %v917_v7   ;;  %795 = vrot.lane.b32.xlu1 %v537_v61, %s3322_s26 }
 0x421   :  { %808 = vrot.lane.b32.xlu1 %v539_v3, %s3324_s28 }
 0x473   :  { %v3048_v8 = vpop.permute.xlu0 %3047  ;;  %v3043_v10 = vpop.permute.xlu1 %3042 }
 0x474   :  { %v3050_v11 = vunpack.i.h.bf16 %v3048_v8  ;;  %v3049_v12 = vunpack.i.l.bf16 %v3048_v8  ;;  %v3045_v14 = vunpack.i.h.bf16 %v3043_v10  ;;  %v3044_v15 = vunpack.i.l.bf16 %v3043_v10 }
 0x476   :  { %v581_v16 = vsel %vm104_vm2, %v3044_v15, %v3045_v14  ;;  %v590_v22 = vsel %vm114_vm1, %v3049_v12, %v3050_v11 }
 0x477   :  { %v3053_v17 = vpop.permute.xlu0 %3052  ;;  %v579_v18 = vpop.permute.xlu1 %578  ;;  %v595_v19 = vpack.c.bf16 %v538_v62, %v581_v16  ;;  %v597_v27 = vpack.c.bf16 %v590_v22, %v590_v22 }
 0x478   :  { %v580_v20 = vsel %vm104_vm2, %v3045_v14, %v579_v18  ;;  %v582_v21 = vsel %vm104_vm2, %v579_v18, %v3044_v15  ;;  %v3055_v32 = vunpack.i.h.bf16 %v3053_v17  ;;  %v3054_v33 = vunpack.i.l.bf16 %v3053_v17  ;;  %v567_v14 = vld [vmem:[%s4201_s6] sm:$0xf] }
 0x479   :  { %v594_v23 = vpack.c.bf16 %v537_v61, %v582_v21  ;;  %v596_v24 = vpack.c.bf16 %v539_v3, %v580_v20  ;;  %612 = vmatprep.subr.bf16.mxu0 %v595_v19  ;;  %v604_v36 = vsel %vm130_vm3, %v597_v27, 0 }
 0x47a   :  { %v547_v43 = vsel %vm67_vm5, %v3054_v33, %v3055_v32 }
 0x47b   :  { %v545_v25 = vpop.permute.xlu0 %544  ;;  %v588_v26 = vpop.permute.xlu1 %587  ;;  %613 = vmatpush1.bf16.msra.mxu0 %v594_v23  ;;  %2841 = vmatpush3.bf16.msra.mxu1 %v596_v24 }
 0x47c   :  { %v589_v28 = vsel %vm114_vm1, %v3050_v11, %v588_v26  ;;  %v591_v29 = vsel %vm114_vm1, %v588_v26, %v3049_v12  ;;  %2842 = vmatprep.subr.bf16.mxu1 %v3314_v0  ;;  %v546_v45 = vsel %vm67_vm5, %v3055_v32, %v545_v25  ;;  %v548_v50 = vsel %vm67_vm5, %v545_v25, %v3054_v33 }
 0x47d   :  { %v598_v30 = vpack.c.bf16 %v589_v28, %v589_v28  ;;  %v599_v31 = vpack.c.bf16 %v591_v29, %v591_v29 }
 0x47f   :  { %v3063_v34 = vpop.permute.xlu0 %3062  ;;  %v3058_v35 = vpop.permute.xlu1 %3057  ;;  %2705 = vmatprep.subr.msk.bf16.mxu0 %vm130_vm3, %v598_v30  ;;  %v610_v37 = vsel %vm130_vm3, %v599_v31, 0 }
 0x480   :  { %v3065_v38 = vunpack.i.h.bf16 %v3063_v34  ;;  %v3064_v39 = vunpack.i.l.bf16 %v3063_v34  ;;  %v3060_v40 = vunpack.i.h.bf16 %v3058_v35  ;;  %v3059_v41 = vunpack.i.l.bf16 %v3058_v35  ;;  %615 = vmatpush1.bf16.msra.mxu0 %v604_v36  ;;  %2843 = vmatpush3.bf16.msra.mxu1 %v610_v37  ;;  %v2711_v34 = vld [vmem:[%s4201_s6 + $0x8] sm:$0xf] }
 0x481   :  { %2848 = vmatprep.subr.bf16.mxu1 %v3314_v0 }
 0x482   :  { %v556_v44 = vsel %vm77_vm4, %v3059_v41, %v3060_v40  ;;  %v565_v46 = vsel %vm87_vm7, %v3064_v39, %v3065_v38 }
 0x483   :  { %v3068_v47 = vpop.permute.xlu0 %3067  ;;  %v554_v48 = vpop.permute.xlu1 %553  ;;  %v569_v49 = vpack.c.bf16 %v556_v44, %v547_v43  ;;  %2706 = vmatmul.mubr.msk.bf16.vlgmr.msra.gmra.mrb[12].mxu0 %vm126_vm6, %v2704_v42  ;;  %2845 = vmatmul.mubr.msk.bf16.vlgmr.msra.gmra.mrb[12].mxu1 %vm126_vm6, %v2704_v42  ;;  %v572_v55 = vpack.c.bf16 %v565_v46, %v565_v46 }
 0x484   :  { %v555_v51 = vsel %vm77_vm4, %v3060_v40, %v554_v48  ;;  %v557_v52 = vsel %vm77_vm4, %v554_v48, %v3059_v41  ;;  %737 = vmatprep.mubr.bf16.mxu0 %v3317_v5  ;;  %2852 = vmatprep.mubr.msk.bf16.mxu1 %vm3318_vm0, %v3314_v0  ;;  %v3070_v62 = vunpack.i.h.bf16 %v3068_v47  ;;  %v3069_v63 = vunpack.i.l.bf16 %v3068_v47 }
 0x485   :  { %v568_v53 = vpack.c.bf16 %v557_v52, %v548_v50  ;;  %v570_v54 = vpack.c.bf16 %v555_v51, %v546_v45  ;;  %705 = vmatprep.subr.bf16.mxu0 %v569_v49 }
 0x486   :  { %v792_v15 = vsel %vm320_vm9, %v3069_v63, %v3070_v62 }
 0x487   :  { %v787_v56 = vpop.permute.xlu0 %786  ;;  %v563_v57 = vpop.permute.xlu1 %562  ;;  %706 = vmatpush1.bf16.msra.mxu0 %v568_v53  ;;  %2849 = vmatpush3.bf16.msra.mxu1 %v570_v54 }
 0x488   :  { %v564_v58 = vsel %vm87_vm7, %v3065_v38, %v563_v57  ;;  %v566_v59 = vsel %vm87_vm7, %v563_v57, %v3064_v39  ;;  %2708 = vmatprep.subr.msk.bf16.mxu0 %vm130_vm3, %v572_v55  ;;  %2850 = vmatprep.subr.bf16.mxu1 %v3314_v0  ;;  %v793_v17 = vsel %vm320_vm9, %v787_v56, %v3069_v63 }
 0x489   :  { %v571_v60 = vpack.c.bf16 %v566_v59, %v566_v59  ;;  %v573_v61 = vpack.c.bf16 %v564_v58, %v564_v58  ;;  %v794_v18 = vsel %vm320_vm9, %v3070_v62, %v787_v56 }
 0x48b   :  { %v3078_v2 = vpop.permute.xlu0 %3077  ;;  %v3073_v3 = vpop.permute.xlu1 %3072  ;;  %v697_v4 = vsel %vm130_vm3, %v571_v60, 0  ;;  %v703_v7 = vsel %vm130_vm3, %v573_v61, 0 }
 0x48c   :  { %v3080_v8 = vunpack.i.h.bf16 %v3078_v2  ;;  %v3079_v10 = vunpack.i.l.bf16 %v3078_v2  ;;  %v3075_v11 = vunpack.i.h.bf16 %v3073_v3  ;;  %v3074_v12 = vunpack.i.l.bf16 %v3073_v3  ;;  %708 = vmatpush1.bf16.msra.mxu0 %v697_v4  ;;  %2851 = vmatpush3.bf16.msra.mxu1 %v703_v7 }
 0x48d   :  { %2856 = vmatprep.subr.bf16.mxu1 %v3314_v0 }
 0x48e   :  { %v801_v16 = vsel %vm330_vm8, %v3074_v12, %v3075_v11  ;;  %v811_v23 = vsel %vm340_vm10, %v3079_v10, %v3080_v8 }
 0x48f   :  { %v796_v19 = vpop.permute.xlu1 %795  ;;  %2709 = vmatmul.mubr.msk.bf16.vlgmr.msra.gmra.mrb[16].mxu0 %vm126_vm6, %v567_v14  ;;  %2853 = vmatmul.mubr.msk.bf16.vlgmr.msra.gmra.mrb[16].mxu1 %vm126_vm6, %v567_v14  ;;  %v816_v20 = vpack.c.bf16 %v801_v16, %v792_v15  ;;  %v818_v27 = vpack.c.bf16 %v811_v23, %v811_v23  ;;  %v978_v16 = vld [vmem:[%s4204_s9] sm:$0xff] }
 0x490   :  { %v802_v21 = vsel %vm330_vm8, %v796_v19, %v3074_v12  ;;  %v803_v22 = vsel %vm330_vm8, %v3075_v11, %v796_v19  ;;  %865 = vmatprep.mubr.bf16.mxu0 %v3317_v5  ;;  %2860 = vmatprep.mubr.msk.bf16.mxu1 %vm3318_vm0, %v3314_v0 }
 0x491   :  { %v815_v24 = vpack.c.bf16 %v802_v21, %v793_v17  ;;  %v817_v25 = vpack.c.bf16 %v803_v22, %v794_v18  ;;  %833 = vmatprep.subr.bf16.mxu0 %v816_v20  ;;  %v825_v32 = vsel %vm130_vm3, %v818_v27, 0 }
 0x493   :  { %v809_v26 = vpop.permute.xlu1 %808  ;;  %834 = vmatpush1.bf16.msra.mxu0 %v815_v24  ;;  %2857 = vmatpush3.bf16.msra.mxu1 %v817_v25 }
 0x494   :  { %v810_v28 = vsel %vm340_vm10, %v3080_v8, %v809_v26  ;;  %v812_v29 = vsel %vm340_vm10, %v809_v26, %v3079_v10  ;;  %2858 = vmatprep.subr.bf16.mxu1 %v3314_v0 }
 0x495   :  { %v819_v30 = vpack.c.bf16 %v810_v28, %v810_v28  ;;  %v820_v31 = vpack.c.bf16 %v812_v29, %v812_v29 }
 0x497   :  { %2712 = vmatprep.subr.msk.bf16.mxu0 %vm130_vm3, %v819_v30  ;;  %v831_v33 = vsel %vm130_vm3, %v820_v31, 0 }
 0x498   :  { %836 = vmatpush1.bf16.msra.mxu0 %v825_v32  ;;  %2859 = vmatpush3.bf16.msra.mxu1 %v831_v33 }
 0x499   :  { %2864 = vmatprep.subr.bf16.mxu1 %v3314_v0 }
 0x49b   :  { %2713 = vmatmul.mubr.msk.bf16.vlgmr.msra.gmra.mrb[20].mxu0 %vm126_vm6, %v2711_v34  ;;  %2861 = vmatmul.mubr.msk.bf16.vlgmr.msra.gmra.mrb[20].mxu1 %vm126_vm6, %v2711_v34 }
 0x49c   :  { %1097 = vmatprep.mubr.bf16.mxu0 %v3317_v5  ;;  %2868 = vmatprep.mubr.msk.bf16.mxu1 %vm3318_vm0, %v3314_v0  ;;  %v921_v54 = vpop.permute.xlu0 %920 }
 0x556   :  { %v646_v35 = vpop.f32.mrb[12].mxu0  ;;  %v687_v36 = vpop.f32.mrb[12].mxu1 }
 0x557   :  { %v648_v37 = vpop.f32.mrb[13].mxu0  ;;  %v2846_v38 = vpop.f32.mrb[13].mxu1 }
 0x558   :  { %v650_v39 = vpop.f32.mrb[14].mxu0  ;;  %v690_v40 = vpop.f32.mrb[14].mxu1 }
 0x559   :  { %v651_v41 = vpop.f32.mrb[15].mxu0  ;;  %v2847_v42 = vpop.f32.mrb[15].mxu1 }
 0x562   :  { %v739_v43 = vpop.f32.mrb[16].mxu0  ;;  %v780_v44 = vpop.f32.mrb[16].mxu1 }
 0x563   :  { %v740_v45 = vadd.f32 %v739_v43, %v646_v35  ;;  %v781_v46 = vadd.f32 %v780_v44, %v687_v36  ;;  %v741_v47 = vpop.f32.mrb[17].mxu0  ;;  %v2854_v48 = vpop.f32.mrb[17].mxu1 }
 0x564   :  { %v742_v49 = vadd.f32 %v741_v47, %v648_v37  ;;  %v743_v50 = vpop.f32.mrb[18].mxu0  ;;  %v783_v51 = vpop.f32.mrb[18].mxu1  ;;  %v3686_v48 = vld [vmem:[%s4195_s0 + $0x20] sm:$0xff] }
 0x565   :  { %v744_v52 = vpop.f32.mrb[19].mxu0  ;;  %v2855_v53 = vpop.f32.mrb[19].mxu1 }
 0x56e   :  { %v867_v55 = vpop.f32.mrb[20].mxu0  ;;  %v908_v56 = vpop.f32.mrb[20].mxu1 }
 0x56f   :  { %v914_v57 = vadd.f32 %v867_v55, %v740_v45  ;;  %v916_v58 = vadd.f32 %v908_v56, %v781_v46  ;;  %v869_v59 = vpop.f32.mrb[21].mxu0  ;;  %v2862_v60 = vpop.f32.mrb[21].mxu1  ;;  %v967_v45 = vld [vmem:[%s4203_s8] sm:$0xff] }
 0x570   :  { %v915_v61 = vadd.f32 %v869_v59, %v742_v49  ;;  %v871_v62 = vpop.f32.mrb[22].mxu0  ;;  %v911_v63 = vpop.f32.mrb[22].mxu1  ;;  %v3691_v49 = vld [vmem:[%s4195_s0 + $0x28] sm:$0xff] }
 0x571   :  { %v923_v2 = vadd.f32 %v921_v54, %v914_v57  ;;  %v872_v3 = vpop.f32.mrb[23].mxu0  ;;  %v2863_v4 = vpop.f32.mrb[23].mxu1  ;;  %v925_v7 = vadd.f32 %v921_v54, %v916_v58  ;;  %v3081_v50 = vpack.i.bf16 %v3691_v49, %v3686_v48  ;;  %v3699_v62 = vld [vmem:[%s4195_s0 + $0x18] sm:$0xff] }
 0x572   :  { %v924_v8 = vadd.f32 %v921_v54, %v915_v61 }
 0x573   :  { %v926_v10 = vmul.f32 %v923_v2, %v3544_v1  ;;  %v928_v12 = vmul.f32 %v925_v7, %v3548_v13 }
 0x574   :  { %v927_v11 = vmul.f32 %v924_v8, %v3546_v6 }
 0x576   :  { %v929_v14 = vadd.f32 %v927_v11, %v926_v10 }
 0x578   :  { %v930_v15 = vadd.f32 %v929_v14, %v928_v12 }
 0x57a   :  { %931 = vadd.xlane.f32.xlu1 %v930_v15 }
 0x58b   :  { %981 = vperm.xlu1 %3040, %v978_v16  }
 0x58f   :  { %3082 = vrot.lane.b32.xlu1 %v3081_v50, %s3316_s1 }
 0x607   :  { %v932_v17 = vpop.xlane.xlu1 %931 }
 0x608   :  { %v933_v18 = vrot.slane %v932_v17, 4 }
 0x60a   :  { %v934_v19 = vadd.f32 %v933_v18, %v932_v17 }
 0x60b   :  { %v982_v55 = vpop.permute.xlu1 %981 }
 0x60c   :  { %v935_v20 = vrot.slane %v934_v19, 2 }
 0x60e   :  { %v936_v21 = vadd.f32 %v935_v20, %v934_v19 }
 0x610   :  { %v937_v22 = vrot.slane %v936_v21, 1 }
 0x612   :  { %v938_v23 = vadd.f32 %v937_v22, %v936_v21 }
 0x614   :  { %2966 = vpush %v938_v23 }
 0x645   :  { %s2967_s17 = spop %2966 }
 0x646   :  { %s940_s18 = smul.f32 0.00048828125, %s2967_s17 }
 0x648   :  { %v941_v24 = vstv %s940_s18 }
 0x649   :  { %v942_v25 = vsub.f32 %v926_v10, %v941_v24  ;;  %v943_v26 = vsub.f32 %v927_v11, %v941_v24  ;;  %v944_v27 = vsub.f32 %v928_v12, %v941_v24  ;;  %v3151_v10 = vpack.i.bf16 %v3686_v48, %v3699_v62  ;;  %v3264_v11 = vld [vmem:[%s4198_s3] sm:$0xff]  ;;  %v3743_v12 = vpop.permute.xlu1 %3082 }
 0x64b   :  { %v945_v28 = vmul.f32 %v942_v25, %v3544_v1  ;;  %v946_v29 = vmul.f32 %v943_v26, %v3546_v6  ;;  %v947_v30 = vmul.f32 %v944_v27, %v3548_v13 }
 0x64d   :  { %v948_v31 = vmul.f32 %v945_v28, %v945_v28  ;;  %v949_v32 = vmul.f32 %v946_v29, %v946_v29  ;;  %v950_v33 = vmul.f32 %v947_v30, %v947_v30 }
 0x64f   :  { %v951_v34 = vadd.f32 %v949_v32, %v948_v31 }
 0x651   :  { %v952_v35 = vadd.f32 %v951_v34, %v950_v33 }
 0x653   :  { %953 = vadd.xlane.f32.xlu0 %v952_v35 }
 0x6e0   :  { %v954_v36 = vpop.xlane.xlu0 %953 }
 0x6e1   :  { %v955_v37 = vrot.slane %v954_v36, 4 }
 0x6e3   :  { %v956_v38 = vadd.f32 %v955_v37, %v954_v36 }
 0x6e5   :  { %v957_v39 = vrot.slane %v956_v38, 2 }
 0x6e7   :  { %v958_v40 = vadd.f32 %v957_v39, %v956_v38 }
 0x6e9   :  { %v959_v41 = vrot.slane %v958_v40, 1 }
 0x6eb   :  { %v960_v42 = vadd.f32 %v959_v41, %v958_v40 }
 0x6ed   :  { %2968 = vpush %v960_v42 }
 0x71e   :  { %s2969_s19 = spop %2968 }
 0x71f   :  { %s962_s21 = smul.f32 0.00048828125, %s2969_s19 }
 0x721   :  { %s963_s22 = sadd.f32 1e-05, %s962_s21 }
 0x723   :  { %v964_v43 = vstv %s963_s22 }
 0x724   :  { %3258 = vrsqrt.f32 %v964_v43 }
 0x72e   :  { %v3259_v44 = vpop.eup %3258 }
 0x72f   :  { %2970 = vpush %v3259_v44 }
 0x760   :  { %s2971_s13 = spop %2970 }
 0x761   :  { %v968_v46 = vstv %s2971_s13 }
 0x762   :  { %v969_v47 = vmul.f32 %v968_v46, %v967_v45  ;;  %v2715_v46 = vld [vmem:[%s4205_s10 + $0x4] sm:$0xf] }
 0x764   :  { %972 = vperm.xlu0 %3039, %v969_v47  }
 0x7e3   :  { %v973_v51 = vpop.permute.xlu0 %972 }
 0x7e4   :  { %v975_v52 = vmul.f32 %v973_v51, %v945_v28  ;;  %v976_v53 = vmul.f32 %v973_v51, %v946_v29  ;;  %v977_v54 = vmul.f32 %v973_v51, %v947_v30 }
 0x7e6   :  { %v984_v56 = vadd.f32 %v982_v55, %v975_v52  ;;  %v985_v57 = vadd.f32 %v982_v55, %v976_v53  ;;  %v986_v58 = vadd.f32 %v982_v55, %v977_v54 }
 0x7e8   :  { %v987_v59 = vmax.f32 %v984_v56, 0.0  ;;  %v988_v60 = vmax.f32 %v985_v57, 0.0  ;;  %v989_v61 = vmax.f32 %v986_v58, 0.0 }
 0x7ea   :  { %v990_v63 = vmul.f32 %v987_v59, %v3544_v1  ;;  %v991_v2 = vmul.f32 %v988_v60, %v3546_v6  ;;  %v992_v3 = vmul.f32 %v989_v61, %v3548_v13 }
 0x7ec   :  { %v3091_v4 = vpack.i.bf16 %v3699_v62, %v992_v3  ;;  %v3086_v7 = vpack.i.bf16 %v991_v2, %v990_v63  ;;  %v3131_v8 = vpack.i.bf16 %v992_v3, %v991_v2 }
 0x7ee   :  { %3092 = vrot.lane.b32.xlu0 %v3091_v4, %s3316_s1  ;;  %3087 = vrot.lane.b32.xlu1 %v3086_v7, %s3316_s1 }
 0x7f2   :  { %3102 = vrot.lane.b32.xlu0 %v3091_v4, %s3315_s20  ;;  %3097 = vrot.lane.b32.xlu1 %v3086_v7, %s3315_s20 }
 0x7f6   :  { %3112 = vrot.lane.b32.xlu0 %v3086_v7, %s3319_s23  ;;  %3107 = vrot.lane.b32.xlu1 %v3086_v7, %s3320_s24 }
 0x7fa   :  { %1006 = vrot.lane.b32.xlu0 %v992_v3, %s3319_s23  ;;  %3117 = vrot.lane.b32.xlu1 %v3091_v4, %s3320_s24 }
 0x7fe   :  { %1015 = vrot.lane.b32.xlu0 %v992_v3, %s3321_s25  ;;  %3122 = vrot.lane.b32.xlu1 %v3086_v7, %s3321_s25 }
 0x802   :  { %3132 = vrot.lane.b32.xlu0 %v3131_v8, %s3322_s26  ;;  %3127 = vrot.lane.b32.xlu1 %v3131_v8, %s3323_s27 }
 0x806   :  { %1248 = vrot.lane.b32.xlu0 %v990_v63, %s3322_s26  ;;  %1239 = vrot.lane.b32.xlu1 %v990_v63, %s3323_s27 }
 0x80a   :  { %1261 = vrot.lane.b32.xlu0 %v992_v3, %s3324_s28  ;;  %3137 = vrot.lane.b32.xlu1 %v3086_v7, %s3324_s28 }
 0x80e   :  { %3142 = vrot.lane.b32.xlu0 %v3081_v50, %s3315_s20  ;;  %3147 = vrot.lane.b32.xlu1 %v3081_v50, %s3320_s24 }
 0x812   :  { %3152 = vrot.lane.b32.xlu0 %v3151_v10, %s3319_s23  ;;  %1399 = vrot.lane.b32.xlu1 %v3691_v49, %s3319_s23 }
 0x816   :  { %3157 = vrot.lane.b32.xlu0 %v3151_v10, %s3321_s25  ;;  %1408 = vrot.lane.b32.xlu1 %v3691_v49, %s3321_s25 }
 0x81a   :  { %3162 = vrot.lane.b32.xlu0 %v3081_v50, %s3323_s27  ;;  %3167 = vrot.lane.b32.xlu1 %v3081_v50, %s3322_s26 }
 0x81e   :  { %1631 = vrot.lane.b32.xlu0 %v3699_v62, %s3323_s27  ;;  %1640 = vrot.lane.b32.xlu1 %v3699_v62, %s3322_s26 }
 0x822   :  { %3172 = vrot.lane.b32.xlu0 %v3151_v10, %s3324_s28  ;;  %1653 = vrot.lane.b32.xlu1 %v3691_v49, %s3324_s28 }
 0x826   :  { %1764 = vperm.xlu0 %3039, %v3264_v11  }
 0x860   :  { %v3745_v14 = vpop.permute.xlu0 %3092  ;;  %v3088_v15 = vpop.permute.xlu1 %3087 }
 0x861   :  { %v3094_v16 = vunpack.i.l.bf16 %v3745_v14  ;;  %v3090_v17 = vunpack.i.h.bf16 %v3088_v15  ;;  %v3089_v18 = vunpack.i.l.bf16 %v3088_v15 }
 0x863   :  { %v1033_v19 = vsel %vm104_vm2, %v3090_v17, %v3094_v16  ;;  %v1035_v20 = vsel %vm104_vm2, %v3094_v16, %v3089_v18  ;;  %v1034_v21 = vsel %vm104_vm2, %v3089_v18, %v3090_v17 }
 0x864   :  { %v1049_v22 = vpack.c.bf16 %v992_v3, %v1033_v19  ;;  %v1047_v23 = vpack.c.bf16 %v990_v63, %v1035_v20  ;;  %v3754_v24 = vpop.permute.xlu0 %3102  ;;  %v3098_v25 = vpop.permute.xlu1 %3097  ;;  %v1048_v26 = vpack.c.bf16 %v991_v2, %v1034_v21 }
 0x865   :  { %v3104_v27 = vunpack.i.l.bf16 %v3754_v24  ;;  %v3100_v28 = vunpack.i.h.bf16 %v3098_v25  ;;  %v3099_v29 = vunpack.i.l.bf16 %v3098_v25 }
 0x866   :  { %1065 = vmatprep.subr.bf16.mxu0 %v1048_v26  ;;  %2865 = vmatpush3.bf16.msra.mxu1 %v1049_v22  ;;  %v1020_v22 = vld [vmem:[%s4205_s10] sm:$0xf] }
 0x867   :  { %v1042_v30 = vsel %vm114_vm1, %v3100_v28, %v3104_v27  ;;  %1066 = vmatpush1.bf16.msra.mxu0 %v1047_v23  ;;  %2866 = vmatprep.subr.bf16.mxu1 %v3314_v0  ;;  %v1043_v31 = vsel %vm114_vm1, %v3099_v29, %v3100_v28  ;;  %v1044_v32 = vsel %vm114_vm1, %v3104_v27, %v3099_v29 }
 0x868   :  { %v1051_v33 = vpack.c.bf16 %v1042_v30, %v1042_v30  ;;  %v3113_v34 = vpop.permute.xlu0 %3112  ;;  %v3108_v35 = vpop.permute.xlu1 %3107  ;;  %v1050_v36 = vpack.c.bf16 %v1043_v31, %v1043_v31  ;;  %v1052_v37 = vpack.c.bf16 %v1044_v32, %v1044_v32 }
 0x869   :  { %v3115_v38 = vunpack.i.h.bf16 %v3113_v34  ;;  %v3114_v39 = vunpack.i.l.bf16 %v3113_v34  ;;  %v3110_v40 = vunpack.i.h.bf16 %v3108_v35  ;;  %v3109_v41 = vunpack.i.l.bf16 %v3108_v35 }
 0x86a   :  { %2716 = vmatprep.subr.msk.bf16.mxu0 %vm130_vm3, %v1051_v33  ;;  %v1057_v42 = vsel %vm130_vm3, %v1050_v36, 0  ;;  %v1063_v43 = vsel %vm130_vm3, %v1052_v37, 0  ;;  %v3095_v35 = vunpack.i.h.bf16 %v3745_v14 }
 0x86b   :  { %1068 = vmatpush1.bf16.msra.mxu0 %v1057_v42  ;;  %2867 = vmatpush3.bf16.msra.mxu1 %v1063_v43  ;;  %v1000_v44 = vsel %vm67_vm5, %v3109_v41, %v3110_v40  ;;  %v1009_v45 = vsel %vm77_vm4, %v3114_v39, %v3115_v38 }
 0x86c   :  { %v1007_v47 = vpop.permute.xlu0 %1006  ;;  %v3774_v50 = vpop.permute.xlu1 %3117  ;;  %v1022_v51 = vpack.c.bf16 %v1009_v45, %v1000_v44  ;;  %2872 = vmatprep.subr.bf16.mxu1 %v3314_v0 }
 0x86d   :  { %v3119_v52 = vunpack.i.l.bf16 %v3774_v50  ;;  %v1008_v53 = vsel %vm77_vm4, %v3115_v38, %v1007_v47  ;;  %v1010_v54 = vsel %vm77_vm4, %v1007_v47, %v3114_v39  ;;  %v3085_v38 = vunpack.i.h.bf16 %v3743_v12 }
 0x86e   :  { %1158 = vmatprep.subr.bf16.mxu0 %v1022_v51  ;;  %2717 = vmatmul.mubr.msk.bf16.vlgmr.msra.gmra.mrb[24].mxu0 %vm126_vm6, %v2715_v46  ;;  %v3084_v39 = vunpack.i.l.bf16 %v3743_v12 }
 0x86f   :  { %v999_v55 = vsel %vm67_vm5, %v3110_v40, %v3119_v52  ;;  %v1001_v56 = vsel %vm67_vm5, %v3119_v52, %v3109_v41  ;;  %2869 = vmatmul.mubr.msk.bf16.vlgmr.msra.gmra.mrb[24].mxu1 %vm126_vm6, %v2715_v46  ;;  %1190 = vmatprep.mubr.bf16.mxu0 %v3317_v5 }
 0x870   :  { %v1021_v57 = vpack.c.bf16 %v1010_v54, %v1001_v56  ;;  %v1023_v58 = vpack.c.bf16 %v1008_v53, %v999_v55  ;;  %v1016_v59 = vpop.permute.xlu0 %1015  ;;  %v3123_v60 = vpop.permute.xlu1 %3122  ;;  %2876 = vmatprep.mubr.msk.bf16.mxu1 %vm3318_vm0, %v3314_v0  ;;  %v1427_v44 = vsel %vm104_vm2, %v3095_v35, %v3084_v39  ;;  %v1426_v52 = vsel %vm104_vm2, %v3084_v39, %v3085_v38 }
 0x871   :  { %v3125_v61 = vunpack.i.h.bf16 %v3123_v60  ;;  %v3124_v63 = vunpack.i.l.bf16 %v3123_v60  ;;  %v1428_v53 = vsel %vm104_vm2, %v3085_v38, %v3095_v35  ;;  %v3105_v56 = vunpack.i.h.bf16 %v3754_v24 }
 0x872   :  { %1159 = vmatpush1.bf16.msra.mxu0 %v1021_v57  ;;  %2873 = vmatpush3.bf16.msra.mxu1 %v1023_v58 }
 0x873   :  { %v1018_v2 = vsel %vm87_vm7, %v3124_v63, %v3125_v61  ;;  %2874 = vmatprep.subr.bf16.mxu1 %v3314_v0  ;;  %v1019_v3 = vsel %vm87_vm7, %v1016_v59, %v3124_v63  ;;  %v1017_v4 = vsel %vm87_vm7, %v3125_v61, %v1016_v59  ;;  %v1440_v59 = vpack.c.bf16 %v3686_v48, %v1427_v44  ;;  %v2722_v61 = vld [vmem:[%s4205_s10 + $0x8] sm:$0xf] }
 0x874   :  { %v1025_v7 = vpack.c.bf16 %v1018_v2, %v1018_v2  ;;  %v3133_v8 = vpop.permute.xlu0 %3132  ;;  %v3128_v10 = vpop.permute.xlu1 %3127  ;;  %v1024_v11 = vpack.c.bf16 %v1019_v3, %v1019_v3  ;;  %v1026_v15 = vpack.c.bf16 %v1017_v4, %v1017_v4  ;;  %v1441_v63 = vpack.c.bf16 %v3691_v49, %v1426_v52 }
 0x875   :  { %v3135_v16 = vunpack.i.h.bf16 %v3133_v8  ;;  %v3134_v17 = vunpack.i.l.bf16 %v3133_v8  ;;  %v3130_v18 = vunpack.i.h.bf16 %v3128_v10  ;;  %v3129_v19 = vunpack.i.l.bf16 %v3128_v10 }
 0x876   :  { %2719 = vmatprep.subr.msk.bf16.mxu0 %vm130_vm3, %v1025_v7  ;;  %v1150_v20 = vsel %vm130_vm3, %v1024_v11, 0  ;;  %v1156_v21 = vsel %vm130_vm3, %v1026_v15, 0  ;;  %v1439_v7 = vpack.c.bf16 %v3699_v62, %v1428_v53  ;;  %v3120_v15 = vunpack.i.h.bf16 %v3774_v50 }
 0x877   :  { %1161 = vmatpush1.bf16.msra.mxu0 %v1150_v20  ;;  %2875 = vmatpush3.bf16.msra.mxu1 %v1156_v21  ;;  %v1245_v23 = vsel %vm320_vm9, %v3129_v19, %v3130_v18  ;;  %v1254_v25 = vsel %vm330_vm8, %v3134_v17, %v3135_v16 }
 0x878   :  { %v1249_v26 = vpop.permute.xlu0 %1248  ;;  %v1240_v27 = vpop.permute.xlu1 %1239  ;;  %v1269_v28 = vpack.c.bf16 %v1254_v25, %v1245_v23  ;;  %2880 = vmatprep.subr.bf16.mxu1 %v3314_v0 }
 0x879   :  { %v1255_v29 = vsel %vm330_vm8, %v1249_v26, %v3134_v17  ;;  %v1256_v30 = vsel %vm330_vm8, %v3135_v16, %v1249_v26  ;;  %v1246_v31 = vsel %vm320_vm9, %v1240_v27, %v3129_v19  ;;  %v1247_v32 = vsel %vm320_vm9, %v3130_v18, %v1240_v27 }
 0x87a   :  { %v1268_v33 = vpack.c.bf16 %v1255_v29, %v1246_v31  ;;  %v1270_v34 = vpack.c.bf16 %v1256_v30, %v1247_v32  ;;  %2720 = vmatmul.mubr.msk.bf16.vlgmr.msra.gmra.mrb[28].mxu0 %vm126_vm6, %v1020_v22  ;;  %2877 = vmatmul.mubr.msk.bf16.vlgmr.msra.gmra.mrb[28].mxu1 %vm126_vm6, %v1020_v22 }
 0x87b   :  { %1286 = vmatprep.subr.bf16.mxu0 %v1269_v28  ;;  %1318 = vmatprep.mubr.bf16.mxu0 %v3317_v5 }
 0x87c   :  { %v1262_v36 = vpop.permute.xlu0 %1261  ;;  %v3138_v37 = vpop.permute.xlu1 %3137  ;;  %1287 = vmatpush1.bf16.msra.mxu0 %v1268_v33  ;;  %2881 = vmatpush3.bf16.msra.mxu1 %v1270_v34  ;;  %v2729_v34 = vld [vmem:[%s4197_s2 + $0x4] sm:$0xf] }
 0x87d   :  { %v3140_v40 = vunpack.i.h.bf16 %v3138_v37  ;;  %v3139_v41 = vunpack.i.l.bf16 %v3138_v37  ;;  %2882 = vmatprep.subr.bf16.mxu1 %v3314_v0  ;;  %2884 = vmatprep.mubr.msk.bf16.mxu1 %vm3318_vm0, %v3314_v0 }
 0x87f   :  { %v1263_v14 = vsel %vm340_vm10, %v3140_v40, %v1262_v36  ;;  %v1264_v42 = vsel %vm340_vm10, %v3139_v41, %v3140_v40  ;;  %v1265_v43 = vsel %vm340_vm10, %v1262_v36, %v3139_v41 }
 0x880   :  { %v1272_v12 = vpack.c.bf16 %v1263_v14, %v1263_v14  ;;  %v3143_v45 = vpop.permute.xlu0 %3142  ;;  %v3148_v46 = vpop.permute.xlu1 %3147  ;;  %v1271_v47 = vpack.c.bf16 %v1264_v42, %v1264_v42  ;;  %v1273_v51 = vpack.c.bf16 %v1265_v43, %v1265_v43 }
 0x881   :  { %v3145_v54 = vunpack.i.h.bf16 %v3143_v45  ;;  %v3144_v55 = vunpack.i.l.bf16 %v3143_v45  ;;  %v3150_v24 = vunpack.i.h.bf16 %v3148_v46  ;;  %v3149_v8 = vunpack.i.l.bf16 %v3148_v46 }
 0x882   :  { %2723 = vmatprep.subr.msk.bf16.mxu0 %vm130_vm3, %v1272_v12  ;;  %v1278_v57 = vsel %vm130_vm3, %v1271_v47, 0  ;;  %v1284_v58 = vsel %vm130_vm3, %v1273_v51, 0 }
 0x883   :  { %v1435_v60 = vsel %vm114_vm1, %v3144_v55, %v3145_v54  ;;  %1289 = vmatpush1.bf16.msra.mxu0 %v1278_v57  ;;  %2883 = vmatpush3.bf16.msra.mxu1 %v1284_v58  ;;  %v1436_v48 = vsel %vm114_vm1, %v3105_v56, %v3144_v55  ;;  %v1437_v4 = vsel %vm114_vm1, %v3145_v54, %v3105_v56  ;;  %v1413_v57 = vld [vmem:[%s4197_s2] sm:$0xf] }
 0x884   :  { %v3153_v2 = vpop.permute.xlu0 %3152  ;;  %v1400_v3 = vpop.permute.xlu1 %1399  ;;  %1457 = vmatprep.subr.bf16.mxu0 %v1440_v59  ;;  %2888 = vmatprep.subr.bf16.mxu1 %v3314_v0  ;;  %v1443_v49 = vpack.c.bf16 %v1435_v60, %v1435_v60  ;;  %v1442_v16 = vpack.c.bf16 %v1436_v48, %v1436_v48  ;;  %v1444_v17 = vpack.c.bf16 %v1437_v4, %v1437_v4 }
 0x885   :  { %v3155_v10 = vunpack.i.h.bf16 %v3153_v2  ;;  %v3154_v11 = vunpack.i.l.bf16 %v3153_v2  ;;  %v1392_v62 = vsel %vm67_vm5, %v3149_v8, %v3150_v24  ;;  %v1394_v19 = vsel %vm67_vm5, %v3150_v24, %v3120_v15 }
 0x886   :  { %2724 = vmatmul.mubr.msk.bf16.vlgmr.msra.gmra.mrb[32].mxu0 %vm126_vm6, %v2722_v61  ;;  %2885 = vmatmul.mubr.msk.bf16.vlgmr.msra.gmra.mrb[32].mxu1 %vm126_vm6, %v2722_v61  ;;  %v1393_v26 = vsel %vm67_vm5, %v3120_v15, %v3149_v8  ;;  %v1449_v28 = vsel %vm130_vm3, %v1442_v16, 0  ;;  %v1455_v29 = vsel %vm130_vm3, %v1444_v17, 0  ;;  %v2736_v15 = vld [vmem:[%s4197_s2 + $0x8] sm:$0xf] }
 0x887   :  { %v1403_v18 = vsel %vm77_vm4, %v1400_v3, %v3154_v11  ;;  %1458 = vmatpush1.bf16.msra.mxu0 %v1439_v7  ;;  %2889 = vmatpush3.bf16.msra.mxu1 %v1441_v63  ;;  %v1402_v21 = vsel %vm77_vm4, %v3154_v11, %v3155_v10  ;;  %v1401_v22 = vsel %vm77_vm4, %v3155_v10, %v1400_v3 }
 0x888   :  { %v3158_v20 = vpop.permute.xlu0 %3157  ;;  %v1409_v50 = vpop.permute.xlu1 %1408  ;;  %2730 = vmatprep.subr.msk.bf16.mxu0 %vm130_vm3, %v1443_v49  ;;  %2890 = vmatprep.subr.bf16.mxu1 %v3314_v0  ;;  %v1414_v27 = vpack.c.bf16 %v1403_v18, %v1394_v19  ;;  %v1415_v30 = vpack.c.bf16 %v1402_v21, %v1393_v26  ;;  %v1416_v35 = vpack.c.bf16 %v1401_v22, %v1392_v62 }
 0x889   :  { %v3160_v23 = vunpack.i.h.bf16 %v3158_v20  ;;  %v3159_v25 = vunpack.i.l.bf16 %v3158_v20  ;;  %1489 = vmatprep.mubr.bf16.mxu0 %v3317_v5  ;;  %2892 = vmatprep.mubr.msk.bf16.mxu1 %vm3318_vm0, %v3314_v0 }
 0x88b   :  { %v1411_v31 = vsel %vm87_vm7, %v3159_v25, %v3160_v23  ;;  %v1410_v32 = vsel %vm87_vm7, %v3160_v23, %v1409_v50  ;;  %v1412_v33 = vsel %vm87_vm7, %v1409_v50, %v3159_v25  ;;  %1460 = vmatpush1.bf16.msra.mxu0 %v1449_v28  ;;  %2891 = vmatpush3.bf16.msra.mxu1 %v1455_v29 }
 0x88c   :  { %v1417_v36 = vpack.c.bf16 %v1412_v33, %v1412_v33  ;;  %v1419_v37 = vpack.c.bf16 %v1410_v32, %v1410_v32  ;;  %v3163_v38 = vpop.permute.xlu0 %3162  ;;  %v3168_v39 = vpop.permute.xlu1 %3167  ;;  %1550 = vmatprep.subr.bf16.mxu0 %v1415_v30  ;;  %2896 = vmatprep.subr.bf16.mxu1 %v3314_v0  ;;  %v1418_v43 = vpack.c.bf16 %v1411_v31, %v1411_v31 }
 0x88d   :  { %v3165_v40 = vunpack.i.h.bf16 %v3163_v38  ;;  %v3164_v41 = vunpack.i.l.bf16 %v3163_v38  ;;  %v3170_v14 = vunpack.i.h.bf16 %v3168_v39  ;;  %v3169_v42 = vunpack.i.l.bf16 %v3168_v39 }
 0x88e   :  { %2731 = vmatmul.mubr.msk.bf16.vlgmr.msra.gmra.mrb[36].mxu0 %vm126_vm6, %v2729_v34  ;;  %2893 = vmatmul.mubr.msk.bf16.vlgmr.msra.gmra.mrb[36].mxu1 %vm126_vm6, %v2729_v34  ;;  %v1542_v47 = vsel %vm130_vm3, %v1417_v36, 0  ;;  %v1548_v51 = vsel %vm130_vm3, %v1419_v37, 0 }
 0x88f   :  { %1551 = vmatpush1.bf16.msra.mxu0 %v1414_v27  ;;  %2897 = vmatpush3.bf16.msra.mxu1 %v1416_v35  ;;  %v1637_v44 = vsel %vm320_vm9, %v3164_v41, %v3165_v40  ;;  %v1646_v12 = vsel %vm330_vm8, %v3169_v42, %v3170_v14 }
 0x890   :  { %v1632_v45 = vpop.permute.xlu0 %1631  ;;  %v1641_v46 = vpop.permute.xlu1 %1640  ;;  %2733 = vmatprep.subr.msk.bf16.mxu0 %vm130_vm3, %v1418_v43  ;;  %2898 = vmatprep.subr.bf16.mxu1 %v3314_v0  ;;  %v1660_v52 = vpack.c.bf16 %v1646_v12, %v1637_v44 }
 0x891   :  { %1582 = vmatprep.mubr.bf16.mxu0 %v3317_v5  ;;  %v1638_v53 = vsel %vm320_vm9, %v1632_v45, %v3164_v41  ;;  %v1639_v54 = vsel %vm320_vm9, %v3165_v40, %v1632_v45  ;;  %v1647_v55 = vsel %vm330_vm8, %v1641_v46, %v3169_v42  ;;  %v1648_v56 = vsel %vm330_vm8, %v3170_v14, %v1641_v46 }
 0x892   :  { %2900 = vmatprep.mubr.msk.bf16.mxu1 %vm3318_vm0, %v3314_v0  ;;  %v1659_v60 = vpack.c.bf16 %v1647_v55, %v1638_v53  ;;  %v1661_v61 = vpack.c.bf16 %v1648_v56, %v1639_v54 }
 0x893   :  { %1553 = vmatpush1.bf16.msra.mxu0 %v1542_v47  ;;  %2899 = vmatpush3.bf16.msra.mxu1 %v1548_v51 }
 0x894   :  { %v3173_v58 = vpop.permute.xlu0 %3172  ;;  %1677 = vmatprep.subr.bf16.mxu0 %v1660_v52  ;;  %v1654_v59 = vpop.permute.xlu1 %1653  ;;  %2904 = vmatprep.subr.bf16.mxu1 %v3314_v0 }
 0x895   :  { %v3175_v63 = vunpack.i.h.bf16 %v3173_v58  ;;  %v3174_v24 = vunpack.i.l.bf16 %v3173_v58 }
 0x896   :  { %2734 = vmatmul.mubr.msk.bf16.vlgmr.msra.gmra.mrb[40].mxu0 %vm126_vm6, %v1413_v57  ;;  %2901 = vmatmul.mubr.msk.bf16.vlgmr.msra.gmra.mrb[40].mxu1 %vm126_vm6, %v1413_v57 }
 0x897   :  { %v1655_v2 = vsel %vm340_vm10, %v3175_v63, %v1654_v59  ;;  %v1657_v3 = vsel %vm340_vm10, %v1654_v59, %v3174_v24  ;;  %1678 = vmatpush1.bf16.msra.mxu0 %v1659_v60  ;;  %2905 = vmatpush3.bf16.msra.mxu1 %v1661_v61  ;;  %v1656_v48 = vsel %vm340_vm10, %v3174_v24, %v3175_v63 }
 0x898   :  { %v1663_v4 = vpack.c.bf16 %v1655_v2, %v1655_v2  ;;  %v1664_v7 = vpack.c.bf16 %v1657_v3, %v1657_v3  ;;  %2906 = vmatprep.subr.bf16.mxu1 %v3314_v0  ;;  %v1662_v8 = vpack.c.bf16 %v1656_v48, %v1656_v48  ;;  %1709 = vmatprep.mubr.bf16.mxu0 %v3317_v5 }
 0x899   :  { %2908 = vmatprep.mubr.msk.bf16.mxu1 %vm3318_vm0, %v3314_v0 }
 0x89a   :  { %2737 = vmatprep.subr.msk.bf16.mxu0 %vm130_vm3, %v1663_v4  ;;  %v1669_v10 = vsel %vm130_vm3, %v1662_v8, 0  ;;  %v1675_v11 = vsel %vm130_vm3, %v1664_v7, 0 }
 0x89b   :  { %1680 = vmatpush1.bf16.msra.mxu0 %v1669_v10  ;;  %2907 = vmatpush3.bf16.msra.mxu1 %v1675_v11 }
 0x89c   :  { %2912 = vmatprep.subr.bf16.mxu1 %v3314_v0 }
 0x89e   :  { %2738 = vmatmul.mubr.msk.bf16.vlgmr.msra.gmra.mrb[44].mxu0 %vm126_vm6, %v2736_v15  ;;  %2909 = vmatmul.mubr.msk.bf16.vlgmr.msra.gmra.mrb[44].mxu1 %vm126_vm6, %v2736_v15 }
 0x89f   :  { %1940 = vmatprep.mubr.bf16.mxu0 %v3317_v5  ;;  %2916 = vmatprep.mubr.msk.bf16.mxu1 %vm3318_vm0, %v3314_v0 }
 0x8a5   :  { %v1765_v2 = vpop.permute.xlu0 %1764 }
 0x941   :  { %v1099_v49 = vpop.f32.mrb[24].mxu0 }
 0x942   :  { %v1101_v16 = vpop.f32.mrb[25].mxu0  ;;  %v1140_v17 = vpop.f32.mrb[24].mxu1 }
 0x943   :  { %v1103_v18 = vpop.f32.mrb[26].mxu0  ;;  %v2870_v62 = vpop.f32.mrb[25].mxu1 }
 0x944   :  { %v1104_v19 = vpop.f32.mrb[27].mxu0  ;;  %v1143_v20 = vpop.f32.mrb[26].mxu1 }
 0x945   :  { %v2871_v50 = vpop.f32.mrb[27].mxu1 }
 0x94d   :  { %v1192_v21 = vpop.f32.mrb[28].mxu0  ;;  %v1233_v22 = vpop.f32.mrb[28].mxu1 }
 0x94e   :  { %v1193_v23 = vadd.f32 %v1192_v21, %v1099_v49  ;;  %v1234_v25 = vadd.f32 %v1233_v22, %v1140_v17  ;;  %v1194_v26 = vpop.f32.mrb[29].mxu0  ;;  %v2878_v27 = vpop.f32.mrb[29].mxu1 }
 0x94f   :  { %v1195_v28 = vadd.f32 %v1194_v26, %v1101_v16  ;;  %v1196_v29 = vpop.f32.mrb[30].mxu0  ;;  %v1236_v30 = vpop.f32.mrb[30].mxu1 }
 0x950   :  { %v1197_v31 = vpop.f32.mrb[31].mxu0  ;;  %v2879_v32 = vpop.f32.mrb[31].mxu1 }
 0x959   :  { %v1320_v33 = vpop.f32.mrb[32].mxu0  ;;  %v1361_v34 = vpop.f32.mrb[32].mxu1 }
 0x95a   :  { %v3936_v35 = vadd.f32 %v1320_v33, %v1193_v23  ;;  %v3938_v36 = vadd.f32 %v1361_v34, %v1234_v25  ;;  %v1322_v37 = vpop.f32.mrb[33].mxu0  ;;  %v2886_v38 = vpop.f32.mrb[33].mxu1  ;;  %v1822_v25 = vld [vmem:[%s4200_s5] sm:$0xff] }
 0x95b   :  { %v3940_v39 = vadd.f32 %v1322_v37, %v1195_v28  ;;  %v1324_v40 = vpop.f32.mrb[34].mxu0  ;;  %v1364_v41 = vpop.f32.mrb[34].mxu1 }
 0x95c   :  { %v1325_v14 = vpop.f32.mrb[35].mxu0  ;;  %v2887_v42 = vpop.f32.mrb[35].mxu1 }
 0x961   :  { %v1491_v43 = vpop.f32.mrb[36].mxu0  ;;  %v1532_v44 = vpop.f32.mrb[36].mxu1 }
 0x962   :  { %v1493_v12 = vpop.f32.mrb[37].mxu0  ;;  %v2894_v45 = vpop.f32.mrb[37].mxu1 }
 0x963   :  { %v1495_v46 = vpop.f32.mrb[38].mxu0  ;;  %v1535_v47 = vpop.f32.mrb[38].mxu1 }
 0x964   :  { %v1496_v51 = vpop.f32.mrb[39].mxu0  ;;  %v2895_v52 = vpop.f32.mrb[39].mxu1 }
 0x969   :  { %v1584_v53 = vpop.f32.mrb[40].mxu0  ;;  %v1625_v54 = vpop.f32.mrb[40].mxu1 }
 0x96a   :  { %v1585_v55 = vadd.f32 %v1584_v53, %v1491_v43  ;;  %v1626_v56 = vadd.f32 %v1625_v54, %v1532_v44  ;;  %v1586_v57 = vpop.f32.mrb[41].mxu0  ;;  %v2902_v58 = vpop.f32.mrb[41].mxu1 }
 0x96b   :  { %v1587_v59 = vadd.f32 %v1586_v57, %v1493_v12  ;;  %v1588_v60 = vpop.f32.mrb[42].mxu0  ;;  %v1628_v61 = vpop.f32.mrb[42].mxu1  ;;  %v1811_v58 = vld [vmem:[%s4199_s4] sm:$0xff] }
 0x96c   :  { %v1589_v63 = vpop.f32.mrb[43].mxu0  ;;  %v2903_v24 = vpop.f32.mrb[43].mxu1 }
 0x971   :  { %v1711_v3 = vpop.f32.mrb[44].mxu0  ;;  %v1752_v48 = vpop.f32.mrb[44].mxu1 }
 0x972   :  { %v1758_v4 = vadd.f32 %v1711_v3, %v1585_v55  ;;  %v1760_v7 = vadd.f32 %v1752_v48, %v1626_v56  ;;  %v1713_v8 = vpop.f32.mrb[45].mxu0  ;;  %v2910_v10 = vpop.f32.mrb[45].mxu1 }
 0x973   :  { %v1759_v11 = vadd.f32 %v1713_v8, %v1587_v59  ;;  %v1715_v15 = vpop.f32.mrb[46].mxu0  ;;  %v1755_v49 = vpop.f32.mrb[46].mxu1 }
 0x974   :  { %v1767_v16 = vadd.f32 %v1765_v2, %v1758_v4  ;;  %v1716_v17 = vpop.f32.mrb[47].mxu0  ;;  %v2911_v18 = vpop.f32.mrb[47].mxu1  ;;  %v1769_v62 = vadd.f32 %v1765_v2, %v1760_v7 }
 0x975   :  { %v1768_v19 = vadd.f32 %v1765_v2, %v1759_v11 }
 0x976   :  { %v1770_v20 = vmul.f32 %v1767_v16, %v3544_v1  ;;  %v1772_v21 = vmul.f32 %v1769_v62, %v3548_v13  ;;  %v2212_v62 = vld [vmem:[%s4202_s7] sm:$0xff] }
 0x977   :  { %v1771_v50 = vmul.f32 %v1768_v19, %v3546_v6 }
 0x979   :  { %v1773_v22 = vadd.f32 %v1771_v50, %v1770_v20 }
 0x97b   :  { %v1774_v23 = vadd.f32 %v1773_v22, %v1772_v21 }
 0x97d   :  { %1775 = vadd.xlane.f32.xlu1 %v1774_v23 }
 0x98e   :  { %1825 = vperm.xlu1 %3040, %v1822_v25  }
 0xa0a   :  { %v1776_v26 = vpop.xlane.xlu1 %1775 }
 0xa0b   :  { %v1777_v27 = vrot.slane %v1776_v26, 4 }
 0xa0d   :  { %v1778_v28 = vadd.f32 %v1777_v27, %v1776_v26 }
 0xa0e   :  { %v1826_v3 = vpop.permute.xlu1 %1825 }
 0xa0f   :  { %v1779_v29 = vrot.slane %v1778_v28, 2 }
 0xa11   :  { %v1780_v30 = vadd.f32 %v1779_v29, %v1778_v28 }
 0xa13   :  { %v1781_v31 = vrot.slane %v1780_v30, 1 }
 0xa15   :  { %v1782_v32 = vadd.f32 %v1781_v31, %v1780_v30 }
 0xa17   :  { %2972 = vpush %v1782_v32 }
 0xa48   :  { %s2973_s3 = spop %2972 }
 0xa49   :  { %s1784_s22 = smul.f32 0.00048828125, %s2973_s3 }
 0xa4b   :  { %v1785_v33 = vstv %s1784_s22 }
 0xa4c   :  { %v1786_v34 = vsub.f32 %v1770_v20, %v1785_v33  ;;  %v1787_v37 = vsub.f32 %v1771_v50, %v1785_v33  ;;  %v1788_v38 = vsub.f32 %v1772_v21, %v1785_v33 }
 0xa4e   :  { %v1789_v40 = vmul.f32 %v1786_v34, %v3544_v1  ;;  %v1790_v41 = vmul.f32 %v1787_v37, %v3546_v6  ;;  %v1791_v14 = vmul.f32 %v1788_v38, %v3548_v13 }
 0xa50   :  { %v1792_v42 = vmul.f32 %v1789_v40, %v1789_v40  ;;  %v1793_v43 = vmul.f32 %v1790_v41, %v1790_v41  ;;  %v1794_v44 = vmul.f32 %v1791_v14, %v1791_v14 }
 0xa52   :  { %v1795_v12 = vadd.f32 %v1793_v43, %v1792_v42 }
 0xa54   :  { %v1796_v45 = vadd.f32 %v1795_v12, %v1794_v44 }
 0xa56   :  { %1797 = vadd.xlane.f32.xlu0 %v1796_v45 }
 0xae3   :  { %v1798_v46 = vpop.xlane.xlu0 %1797 }
 0xae4   :  { %v1799_v47 = vrot.slane %v1798_v46, 4 }
 0xae6   :  { %v1800_v51 = vadd.f32 %v1799_v47, %v1798_v46 }
 0xae8   :  { %v1801_v52 = vrot.slane %v1800_v51, 2 }
 0xaea   :  { %v1802_v53 = vadd.f32 %v1801_v52, %v1800_v51 }
 0xaec   :  { %v1803_v54 = vrot.slane %v1802_v53, 1 }
 0xaee   :  { %v1804_v55 = vadd.f32 %v1803_v54, %v1802_v53  ;;  %v2740_v54 = vld [vmem:[%s4201_s6 + $0x4] sm:$0xf] }
 0xaf0   :  { %2974 = vpush %v1804_v55 }
 0xb21   :  { %s2975_s5 = spop %2974 }
 0xb22   :  { %s1806_s29 = smul.f32 0.00048828125, %s2975_s5 }
 0xb24   :  { %s1807_s30 = sadd.f32 1e-05, %s1806_s29 }
 0xb26   :  { %v1808_v56 = vstv %s1807_s30 }
 0xb27   :  { %3260 = vrsqrt.f32 %v1808_v56 }
 0xb31   :  { %v3261_v57 = vpop.eup %3260 }
 0xb32   :  { %2976 = vpush %v3261_v57 }
 0xb63   :  { %s2977_s15 = spop %2976 }
 0xb64   :  { %v1812_v59 = vstv %s2977_s15 }
 0xb65   :  { %v1813_v60 = vmul.f32 %v1812_v59, %v1811_v58 }
 0xb67   :  { %1816 = vperm.xlu0 %3039, %v1813_v60  }
 0xbe6   :  { %v1817_v61 = vpop.permute.xlu0 %1816 }
 0xbe7   :  { %v1819_v63 = vmul.f32 %v1817_v61, %v1789_v40  ;;  %v1820_v24 = vmul.f32 %v1817_v61, %v1790_v41  ;;  %v1821_v2 = vmul.f32 %v1817_v61, %v1791_v14 }
 0xbe9   :  { %v1828_v48 = vadd.f32 %v1826_v3, %v1819_v63  ;;  %v1829_v4 = vadd.f32 %v1826_v3, %v1820_v24  ;;  %v1830_v7 = vadd.f32 %v1826_v3, %v1821_v2 }
 0xbeb   :  { %v1831_v8 = vmax.f32 %v1828_v48, 0.0  ;;  %v1832_v10 = vmax.f32 %v1829_v4, 0.0  ;;  %v1833_v11 = vmax.f32 %v1830_v7, 0.0 }
 0xbed   :  { %v1834_v15 = vmul.f32 %v1831_v8, %v3544_v1  ;;  %v1835_v49 = vmul.f32 %v1832_v10, %v3546_v6  ;;  %v1836_v16 = vmul.f32 %v1833_v11, %v3548_v13 }
 0xbef   :  { %1875 = vrot.lane.b32.xlu0 %v1836_v16, %s3316_s1  ;;  %v3176_v17 = vpack.i.bf16 %v1835_v49, %v1834_v15  ;;  %v3206_v18 = vpack.i.bf16 %v1836_v16, %v1835_v49 }
 0xbf1   :  { %3177 = vrot.lane.b32.xlu1 %v3176_v17, %s3316_s1 }
 0xbf3   :  { %1884 = vrot.lane.b32.xlu0 %v1836_v16, %s3315_s20 }
 0xbf5   :  { %3182 = vrot.lane.b32.xlu1 %v3176_v17, %s3315_s20 }
 0xbf7   :  { %3192 = vrot.lane.b32.xlu0 %v3176_v17, %s3319_s23 }
 0xbf9   :  { %3187 = vrot.lane.b32.xlu1 %v3176_v17, %s3320_s24 }
 0xbfb   :  { %1850 = vrot.lane.b32.xlu0 %v1836_v16, %s3319_s23 }
 0xbfd   :  { %1841 = vrot.lane.b32.xlu1 %v1836_v16, %s3320_s24 }
 0xbff   :  { %1859 = vrot.lane.b32.xlu0 %v1836_v16, %s3321_s25 }
 0xc01   :  { %3197 = vrot.lane.b32.xlu1 %v3176_v17, %s3321_s25 }
 0xc03   :  { %3207 = vrot.lane.b32.xlu0 %v3206_v18, %s3322_s26 }
 0xc05   :  { %3202 = vrot.lane.b32.xlu1 %v3206_v18, %s3323_s27 }
 0xc07   :  { %2091 = vrot.lane.b32.xlu0 %v1834_v15, %s3322_s26 }
 0xc09   :  { %2082 = vrot.lane.b32.xlu1 %v1834_v15, %s3323_s27 }
 0xc0b   :  { %2104 = vrot.lane.b32.xlu0 %v1836_v16, %s3324_s28 }
 0xc0d   :  { %3212 = vrot.lane.b32.xlu1 %v3176_v17, %s3324_s28 }
 0xc11   :  { %2215 = vperm.xlu1 %3040, %v2212_v62  }
 0xc61   :  { %v1876_v19 = vpop.permute.xlu0 %1875 }
 0xc63   :  { %v3178_v20 = vpop.permute.xlu1 %3177 }
 0xc64   :  { %v3180_v50 = vunpack.i.h.bf16 %v3178_v20  ;;  %v3179_v21 = vunpack.i.l.bf16 %v3178_v20 }
 0xc65   :  { %v1885_v22 = vpop.permute.xlu0 %1884 }
 0xc66   :  { %v1877_v23 = vsel %vm104_vm2, %v3180_v50, %v1876_v19  ;;  %v1879_v25 = vsel %vm104_vm2, %v1876_v19, %v3179_v21  ;;  %v1878_v26 = vsel %vm104_vm2, %v3179_v21, %v3180_v50 }
 0xc67   :  { %v1892_v27 = vpack.c.bf16 %v1836_v16, %v1877_v23  ;;  %v1890_v28 = vpack.c.bf16 %v1834_v15, %v1879_v25  ;;  %v3183_v29 = vpop.permute.xlu1 %3182  ;;  %v1891_v30 = vpack.c.bf16 %v1835_v49, %v1878_v26 }
 0xc68   :  { %v3185_v31 = vunpack.i.h.bf16 %v3183_v29  ;;  %v3184_v32 = vunpack.i.l.bf16 %v3183_v29 }
 0xc69   :  { %v3193_v33 = vpop.permute.xlu0 %3192  ;;  %1908 = vmatprep.subr.bf16.mxu0 %v1891_v30  ;;  %2913 = vmatpush3.bf16.msra.mxu1 %v1892_v27 }
 0xc6a   :  { %v1886_v34 = vsel %vm114_vm1, %v3185_v31, %v1885_v22  ;;  %v3195_v37 = vunpack.i.h.bf16 %v3193_v33  ;;  %v3194_v38 = vunpack.i.l.bf16 %v3193_v33  ;;  %1909 = vmatpush1.bf16.msra.mxu0 %v1890_v28  ;;  %2914 = vmatprep.subr.bf16.mxu1 %v3314_v0  ;;  %v1887_v40 = vsel %vm114_vm1, %v3184_v32, %v3185_v31 }
 0xc6b   :  { %v1894_v41 = vpack.c.bf16 %v1886_v34, %v1886_v34  ;;  %v3188_v14 = vpop.permute.xlu1 %3187  ;;  %v1893_v42 = vpack.c.bf16 %v1887_v40, %v1887_v40  ;;  %v1888_v43 = vsel %vm114_vm1, %v1885_v22, %v3184_v32  ;;  %v1864_v22 = vld [vmem:[%s4201_s6] sm:$0xf] }
 0xc6c   :  { %v3190_v44 = vunpack.i.h.bf16 %v3188_v14  ;;  %v3189_v12 = vunpack.i.l.bf16 %v3188_v14  ;;  %v1895_v45 = vpack.c.bf16 %v1888_v43, %v1888_v43  ;;  %v1853_v53 = vsel %vm77_vm4, %v3194_v38, %v3195_v37 }
 0xc6d   :  { %v1851_v46 = vpop.permute.xlu0 %1850  ;;  %2741 = vmatprep.subr.msk.bf16.mxu0 %vm130_vm3, %v1894_v41  ;;  %v1900_v47 = vsel %vm130_vm3, %v1893_v42, 0 }
 0xc6e   :  { %1911 = vmatpush1.bf16.msra.mxu0 %v1900_v47  ;;  %v1906_v51 = vsel %vm130_vm3, %v1895_v45, 0  ;;  %v1844_v52 = vsel %vm67_vm5, %v3189_v12, %v3190_v44  ;;  %v1852_v57 = vsel %vm77_vm4, %v3195_v37, %v1851_v46  ;;  %v1854_v58 = vsel %vm77_vm4, %v1851_v46, %v3194_v38  ;;  %v2747_v47 = vld [vmem:[%s4201_s6 + $0x8] sm:$0xf] }
 0xc6f   :  { %2915 = vmatpush3.bf16.msra.mxu1 %v1906_v51  ;;  %v1842_v55 = vpop.permute.xlu1 %1841  ;;  %v1866_v56 = vpack.c.bf16 %v1853_v53, %v1844_v52 }
 0xc70   :  { %v1843_v59 = vsel %vm67_vm5, %v3190_v44, %v1842_v55  ;;  %v1845_v60 = vsel %vm67_vm5, %v1842_v55, %v3189_v12  ;;  %2920 = vmatprep.subr.bf16.mxu1 %v3314_v0 }
 0xc71   :  { %v1865_v61 = vpack.c.bf16 %v1854_v58, %v1845_v60  ;;  %v1867_v63 = vpack.c.bf16 %v1852_v57, %v1843_v59  ;;  %v1860_v24 = vpop.permute.xlu0 %1859  ;;  %2001 = vmatprep.subr.bf16.mxu0 %v1866_v56  ;;  %2742 = vmatmul.mubr.msk.bf16.vlgmr.msra.gmra.mrb[48].mxu0 %vm126_vm6, %v2740_v54 }
 0xc72   :  { %2917 = vmatmul.mubr.msk.bf16.vlgmr.msra.gmra.mrb[48].mxu1 %vm126_vm6, %v2740_v54  ;;  %2033 = vmatprep.mubr.bf16.mxu0 %v3317_v5 }
 0xc73   :  { %v3198_v2 = vpop.permute.xlu1 %3197  ;;  %2002 = vmatpush1.bf16.msra.mxu0 %v1865_v61  ;;  %2921 = vmatpush3.bf16.msra.mxu1 %v1867_v63 }
 0xc74   :  { %v3200_v3 = vunpack.i.h.bf16 %v3198_v2  ;;  %v3199_v48 = vunpack.i.l.bf16 %v3198_v2  ;;  %2922 = vmatprep.subr.bf16.mxu1 %v3314_v0  ;;  %2924 = vmatprep.mubr.msk.bf16.mxu1 %vm3318_vm0, %v3314_v0 }
 0xc75   :  { %v3208_v4 = vpop.permute.xlu0 %3207 }
 0xc76   :  { %v1862_v7 = vsel %vm87_vm7, %v3199_v48, %v3200_v3  ;;  %v3210_v8 = vunpack.i.h.bf16 %v3208_v4  ;;  %v3209_v10 = vunpack.i.l.bf16 %v3208_v4  ;;  %v1863_v11 = vsel %vm87_vm7, %v1860_v24, %v3199_v48 }
 0xc77   :  { %v1869_v15 = vpack.c.bf16 %v1862_v7, %v1862_v7  ;;  %v3203_v49 = vpop.permute.xlu1 %3202  ;;  %v1868_v16 = vpack.c.bf16 %v1863_v11, %v1863_v11  ;;  %v1861_v17 = vsel %vm87_vm7, %v3200_v3, %v1860_v24 }
 0xc78   :  { %v3205_v18 = vunpack.i.h.bf16 %v3203_v49  ;;  %v3204_v62 = vunpack.i.l.bf16 %v3203_v49  ;;  %v1870_v19 = vpack.c.bf16 %v1861_v17, %v1861_v17  ;;  %v2097_v25 = vsel %vm330_vm8, %v3209_v10, %v3210_v8 }
 0xc79   :  { %v2092_v20 = vpop.permute.xlu0 %2091  ;;  %2744 = vmatprep.subr.msk.bf16.mxu0 %vm130_vm3, %v1869_v15  ;;  %v1993_v50 = vsel %vm130_vm3, %v1868_v16, 0 }
 0xc7a   :  { %2004 = vmatpush1.bf16.msra.mxu0 %v1993_v50  ;;  %v1999_v21 = vsel %vm130_vm3, %v1870_v19, 0  ;;  %v2088_v23 = vsel %vm320_vm9, %v3204_v62, %v3205_v18  ;;  %v2098_v28 = vsel %vm330_vm8, %v2092_v20, %v3209_v10  ;;  %v2099_v29 = vsel %vm330_vm8, %v3210_v8, %v2092_v20 }
 0xc7b   :  { %2923 = vmatpush3.bf16.msra.mxu1 %v1999_v21  ;;  %v2083_v26 = vpop.permute.xlu1 %2082  ;;  %v2111_v27 = vpack.c.bf16 %v2097_v25, %v2088_v23 }
 0xc7c   :  { %v2089_v30 = vsel %vm320_vm9, %v2083_v26, %v3204_v62  ;;  %v2090_v31 = vsel %vm320_vm9, %v3205_v18, %v2083_v26  ;;  %2928 = vmatprep.subr.bf16.mxu1 %v3314_v0 }
 0xc7d   :  { %v2110_v32 = vpack.c.bf16 %v2098_v28, %v2089_v30  ;;  %v2112_v33 = vpack.c.bf16 %v2099_v29, %v2090_v31  ;;  %2745 = vmatmul.mubr.msk.bf16.vlgmr.msra.gmra.mrb[52].mxu0 %vm126_vm6, %v1864_v22  ;;  %2128 = vmatprep.subr.bf16.mxu0 %v2111_v27  ;;  %v2105_v40 = vpop.permute.xlu0 %2104 }
 0xc7e   :  { %2925 = vmatmul.mubr.msk.bf16.vlgmr.msra.gmra.mrb[52].mxu1 %vm126_vm6, %v1864_v22  ;;  %2160 = vmatprep.mubr.bf16.mxu0 %v3317_v5 }
 0xc7f   :  { %v3213_v34 = vpop.permute.xlu1 %3212  ;;  %2129 = vmatpush1.bf16.msra.mxu0 %v2110_v32  ;;  %2929 = vmatpush3.bf16.msra.mxu1 %v2112_v33 }
 0xc80   :  { %v3215_v37 = vunpack.i.h.bf16 %v3213_v34  ;;  %v3214_v38 = vunpack.i.l.bf16 %v3213_v34  ;;  %2930 = vmatprep.subr.bf16.mxu1 %v3314_v0  ;;  %2932 = vmatprep.mubr.msk.bf16.mxu1 %vm3318_vm0, %v3314_v0 }
 0xc82   :  { %v2106_v41 = vsel %vm340_vm10, %v3215_v37, %v2105_v40  ;;  %v2107_v14 = vsel %vm340_vm10, %v3214_v38, %v3215_v37  ;;  %v2108_v42 = vsel %vm340_vm10, %v2105_v40, %v3214_v38 }
 0xc83   :  { %v2114_v43 = vpack.c.bf16 %v2106_v41, %v2106_v41  ;;  %v2113_v44 = vpack.c.bf16 %v2107_v14, %v2107_v14  ;;  %v2115_v12 = vpack.c.bf16 %v2108_v42, %v2108_v42 }
 0xc85   :  { %2748 = vmatprep.subr.msk.bf16.mxu0 %vm130_vm3, %v2114_v43  ;;  %v2120_v45 = vsel %vm130_vm3, %v2113_v44, 0  ;;  %v2126_v46 = vsel %vm130_vm3, %v2115_v12, 0 }
 0xc86   :  { %2131 = vmatpush1.bf16.msra.mxu0 %v2120_v45  ;;  %2931 = vmatpush3.bf16.msra.mxu1 %v2126_v46 }
 0xc87   :  { %2936 = vmatprep.subr.bf16.mxu1 %v3314_v0 }
 0xc89   :  { %2749 = vmatmul.mubr.msk.bf16.vlgmr.msra.gmra.mrb[56].mxu0 %vm126_vm6, %v2747_v47  ;;  %2933 = vmatmul.mubr.msk.bf16.vlgmr.msra.gmra.mrb[56].mxu1 %vm126_vm6, %v2747_v47 }
 0xc8a   :  { %2391 = vmatprep.mubr.bf16.mxu0 %v3317_v5  ;;  %2940 = vmatprep.mubr.msk.bf16.mxu1 %vm3318_vm0, %v3314_v0 }
 0xc90   :  { %v2216_v10 = vpop.permute.xlu1 %2215 }
 0xd44   :  { %v1942_v51 = vpop.f32.mrb[48].mxu0 }
 0xd45   :  { %v1944_v52 = vpop.f32.mrb[49].mxu0  ;;  %v1983_v53 = vpop.f32.mrb[48].mxu1 }
 0xd46   :  { %v1946_v54 = vpop.f32.mrb[50].mxu0  ;;  %v2918_v55 = vpop.f32.mrb[49].mxu1 }
 0xd47   :  { %v1947_v56 = vpop.f32.mrb[51].mxu0  ;;  %v1986_v57 = vpop.f32.mrb[50].mxu1  ;;  %v2273_v54 = vld [vmem:[%s4204_s9] sm:$0xff] }
 0xd48   :  { %v2919_v58 = vpop.f32.mrb[51].mxu1 }
 0xd50   :  { %v2035_v59 = vpop.f32.mrb[52].mxu0 }
 0xd51   :  { %v2036_v60 = vadd.f32 %v2035_v59, %v1942_v51  ;;  %v2076_v61 = vpop.f32.mrb[52].mxu1  ;;  %v2037_v63 = vpop.f32.mrb[53].mxu0 }
 0xd52   :  { %v2077_v24 = vadd.f32 %v2076_v61, %v1983_v53  ;;  %v2038_v2 = vadd.f32 %v2037_v63, %v1944_v52  ;;  %v2039_v3 = vpop.f32.mrb[54].mxu0  ;;  %v2926_v48 = vpop.f32.mrb[53].mxu1 }
 0xd53   :  { %v2040_v4 = vpop.f32.mrb[55].mxu0  ;;  %v2079_v7 = vpop.f32.mrb[54].mxu1 }
 0xd54   :  { %v2927_v8 = vpop.f32.mrb[55].mxu1 }
 0xd5c   :  { %v2162_v11 = vpop.f32.mrb[56].mxu0  ;;  %v2203_v15 = vpop.f32.mrb[56].mxu1 }
 0xd5d   :  { %v2209_v49 = vadd.f32 %v2162_v11, %v2036_v60  ;;  %v2211_v16 = vadd.f32 %v2203_v15, %v2077_v24  ;;  %v2164_v17 = vpop.f32.mrb[57].mxu0  ;;  %v2934_v18 = vpop.f32.mrb[57].mxu1 }
 0xd5e   :  { %v2210_v62 = vadd.f32 %v2164_v17, %v2038_v2  ;;  %v2166_v19 = vpop.f32.mrb[58].mxu0  ;;  %v2206_v20 = vpop.f32.mrb[58].mxu1  ;;  %v2262_v2 = vld [vmem:[%s4203_s8] sm:$0xff] }
 0xd5f   :  { %v2218_v50 = vadd.f32 %v2216_v10, %v2209_v49  ;;  %v2167_v21 = vpop.f32.mrb[59].mxu0  ;;  %v2935_v22 = vpop.f32.mrb[59].mxu1  ;;  %v2220_v23 = vadd.f32 %v2216_v10, %v2211_v16 }
 0xd60   :  { %v2219_v25 = vadd.f32 %v2216_v10, %v2210_v62 }
 0xd61   :  { %v2221_v26 = vmul.f32 %v2218_v50, %v3544_v1  ;;  %v2223_v28 = vmul.f32 %v2220_v23, %v3548_v13 }
 0xd62   :  { %v2222_v27 = vmul.f32 %v2219_v25, %v3546_v6 }
 0xd64   :  { %v2224_v29 = vadd.f32 %v2222_v27, %v2221_v26 }
 0xd66   :  { %v2225_v30 = vadd.f32 %v2224_v29, %v2223_v28 }
 0xd68   :  { %2226 = vadd.xlane.f32.xlu0 %v2225_v30 }
 0xdf5   :  { %v2227_v31 = vpop.xlane.xlu0 %2226 }
 0xdf6   :  { %v2228_v32 = vrot.slane %v2227_v31, 4 }
 0xdf8   :  { %v2229_v33 = vadd.f32 %v2228_v32, %v2227_v31 }
 0xdfa   :  { %v2230_v34 = vrot.slane %v2229_v33, 2 }
 0xdfc   :  { %v2231_v37 = vadd.f32 %v2230_v34, %v2229_v33 }
 0xdfe   :  { %v2232_v38 = vrot.slane %v2231_v37, 1 }
 0xe00   :  { %v2233_v40 = vadd.f32 %v2232_v38, %v2231_v37 }
 0xe02   :  { %2978 = vpush %v2233_v40 }
 0xe33   :  { %s2979_s6 = spop %2978 }
 0xe34   :  { %s2235_s21 = smul.f32 0.00048828125, %s2979_s6 }
 0xe36   :  { %v2236_v41 = vstv %s2235_s21 }
 0xe37   :  { %v2237_v14 = vsub.f32 %v2221_v26, %v2236_v41  ;;  %v2238_v42 = vsub.f32 %v2222_v27, %v2236_v41  ;;  %v2239_v43 = vsub.f32 %v2223_v28, %v2236_v41 }
 0xe39   :  { %v2240_v44 = vmul.f32 %v2237_v14, %v3544_v1  ;;  %v2241_v12 = vmul.f32 %v2238_v42, %v3546_v6  ;;  %v2242_v45 = vmul.f32 %v2239_v43, %v3548_v13 }
 0xe3b   :  { %v2243_v46 = vmul.f32 %v2240_v44, %v2240_v44  ;;  %v2244_v47 = vmul.f32 %v2241_v12, %v2241_v12  ;;  %v2245_v51 = vmul.f32 %v2242_v45, %v2242_v45 }
 0xe3d   :  { %v2246_v52 = vadd.f32 %v2244_v47, %v2243_v46 }
 0xe3f   :  { %v2247_v53 = vadd.f32 %v2246_v52, %v2245_v51 }
 0xe41   :  { %2248 = vadd.xlane.f32.xlu1 %v2247_v53 }
 0xe52   :  { %2276 = vperm.xlu1 %3040, %v2273_v54  }
 0xece   :  { %v2249_v55 = vpop.xlane.xlu1 %2248 }
 0xecf   :  { %v2250_v56 = vrot.slane %v2249_v55, 4 }
 0xed1   :  { %v2251_v57 = vadd.f32 %v2250_v56, %v2249_v55 }
 0xed2   :  { %v2277_v11 = vpop.permute.xlu1 %2276 }
 0xed3   :  { %v2252_v58 = vrot.slane %v2251_v57, 2 }
 0xed5   :  { %v2253_v59 = vadd.f32 %v2252_v58, %v2251_v57  ;;  %v2751_v57 = vld [vmem:[%s4205_s10 + $0x4] sm:$0xf] }
 0xed7   :  { %v2254_v60 = vrot.slane %v2253_v59, 1 }
 0xed9   :  { %v2255_v61 = vadd.f32 %v2254_v60, %v2253_v59 }
 0xedb   :  { %2980 = vpush %v2255_v61 }
 0xf0c   :  { %s2981_s5 = spop %2980 }
 0xf0d   :  { %s2257_s29 = smul.f32 0.00048828125, %s2981_s5 }
 0xf0f   :  { %s2258_s30 = sadd.f32 1e-05, %s2257_s29 }
 0xf11   :  { %v2259_v63 = vstv %s2258_s30 }
 0xf12   :  { %3262 = vrsqrt.f32 %v2259_v63 }
 0xf1c   :  { %v3263_v24 = vpop.eup %3262 }
 0xf1d   :  { %2982 = vpush %v3263_v24 }
 0xf4e   :  { %s2983_s9 = spop %2982 }
 0xf4f   :  { %v2263_v3 = vstv %s2983_s9 }
 0xf50   :  { %v2264_v48 = vmul.f32 %v2263_v3, %v2262_v2 }
 0xf52   :  { %2267 = vperm.xlu0 %3039, %v2264_v48  }
 0xfd1   :  { %v2268_v4 = vpop.permute.xlu0 %2267 }
 0xfd2   :  { %v2270_v7 = vmul.f32 %v2268_v4, %v2240_v44  ;;  %v2271_v8 = vmul.f32 %v2268_v4, %v2241_v12  ;;  %v2272_v10 = vmul.f32 %v2268_v4, %v2242_v45 }
 0xfd4   :  { %v2279_v15 = vadd.f32 %v2277_v11, %v2270_v7  ;;  %v2280_v49 = vadd.f32 %v2277_v11, %v2271_v8  ;;  %v2281_v16 = vadd.f32 %v2277_v11, %v2272_v10 }
 0xfd6   :  { %v2282_v17 = vmax.f32 %v2279_v15, 0.0  ;;  %v2283_v18 = vmax.f32 %v2280_v49, 0.0  ;;  %v2284_v62 = vmax.f32 %v2281_v16, 0.0 }
 0xfd8   :  { %v2285_v19 = vmul.f32 %v2282_v17, %v3544_v1  ;;  %v2286_v20 = vmul.f32 %v2283_v18, %v3546_v6  ;;  %v2287_v50 = vmul.f32 %v2284_v62, %v3548_v13  ;;  %v2663_v6 = vld [vmem:[%s4206_s11] sm:$0xff] }
 0xfda   :  { %2326 = vrot.lane.b32.xlu1 %v2287_v50, %s3316_s1  ;;  %v3216_v21 = vpack.i.bf16 %v2286_v20, %v2285_v19  ;;  %v3246_v1 = vpack.i.bf16 %v2287_v50, %v2286_v20 }
 0xfdc   :  { %3217 = vrot.lane.b32.xlu0 %v3216_v21, %s3316_s1 }
 0xfde   :  { %2335 = vrot.lane.b32.xlu1 %v2287_v50, %s3315_s20 }
 0xfe0   :  { %3222 = vrot.lane.b32.xlu0 %v3216_v21, %s3315_s20 }
 0xfe2   :  { %3232 = vrot.lane.b32.xlu1 %v3216_v21, %s3319_s23 }
 0xfe4   :  { %3227 = vrot.lane.b32.xlu0 %v3216_v21, %s3320_s24 }
 0xfe6   :  { %2301 = vrot.lane.b32.xlu1 %v2287_v50, %s3319_s23 }
 0xfe8   :  { %2292 = vrot.lane.b32.xlu0 %v2287_v50, %s3320_s24 }
 0xfea   :  { %2310 = vrot.lane.b32.xlu1 %v2287_v50, %s3321_s25 }
 0xfec   :  { %3237 = vrot.lane.b32.xlu0 %v3216_v21, %s3321_s25 }
 0xfee   :  { %3247 = vrot.lane.b32.xlu1 %v3246_v1, %s3322_s26 }
 0xff0   :  { %3242 = vrot.lane.b32.xlu0 %v3246_v1, %s3323_s27 }
 0xff2   :  { %2542 = vrot.lane.b32.xlu1 %v2285_v19, %s3322_s26 }
 0xff4   :  { %2533 = vrot.lane.b32.xlu0 %v2285_v19, %s3323_s27 }
 0xff6   :  { %2555 = vrot.lane.b32.xlu1 %v2287_v50, %s3324_s28 }
 0xff8   :  { %3252 = vrot.lane.b32.xlu0 %v3216_v21, %s3324_s28 }
 0xffa   :  { %2666 = vperm.xlu1 %3040, %v2663_v6  }
 0xffc   :  { %1373 = vperm.xlu0 %3039, %v2663_v6  }
0x104c   :  { %v2327_v13 = vpop.permute.xlu1 %2326 }
0x104e   :  { %v3218_v22 = vpop.permute.xlu0 %3217 }
0x104f   :  { %v3220_v23 = vunpack.i.h.bf16 %v3218_v22  ;;  %v3219_v25 = vunpack.i.l.bf16 %v3218_v22  ;;  %v2315_v22 = vld [vmem:[%s4205_s10] sm:$0xf] }
0x1050   :  { %v2336_v26 = vpop.permute.xlu1 %2335 }
0x1051   :  { %v2328_v27 = vsel %vm104_vm2, %v3220_v23, %v2327_v13  ;;  %v2330_v28 = vsel %vm104_vm2, %v2327_v13, %v3219_v25  ;;  %v2329_v29 = vsel %vm104_vm2, %v3219_v25, %v3220_v23 }
0x1052   :  { %v2343_v30 = vpack.c.bf16 %v2287_v50, %v2328_v27  ;;  %v2341_v31 = vpack.c.bf16 %v2285_v19, %v2330_v28  ;;  %v3223_v32 = vpop.permute.xlu0 %3222  ;;  %v2342_v33 = vpack.c.bf16 %v2286_v20, %v2329_v29 }
0x1053   :  { %v3225_v34 = vunpack.i.h.bf16 %v3223_v32  ;;  %v3224_v37 = vunpack.i.l.bf16 %v3223_v32 }
0x1054   :  { %v3233_v38 = vpop.permute.xlu1 %3232  ;;  %2359 = vmatprep.subr.bf16.mxu0 %v2342_v33  ;;  %2937 = vmatpush3.bf16.msra.mxu1 %v2343_v30 }
0x1055   :  { %v2337_v40 = vsel %vm114_vm1, %v3225_v34, %v2336_v26  ;;  %v3235_v41 = vunpack.i.h.bf16 %v3233_v38  ;;  %v3234_v14 = vunpack.i.l.bf16 %v3233_v38  ;;  %2360 = vmatpush1.bf16.msra.mxu0 %v2341_v31  ;;  %2938 = vmatprep.subr.bf16.mxu1 %v3314_v0  ;;  %v2338_v42 = vsel %vm114_vm1, %v3224_v37, %v3225_v34 }
0x1056   :  { %v2345_v43 = vpack.c.bf16 %v2337_v40, %v2337_v40  ;;  %v3228_v44 = vpop.permute.xlu0 %3227  ;;  %v2344_v12 = vpack.c.bf16 %v2338_v42, %v2338_v42  ;;  %v2339_v45 = vsel %vm114_vm1, %v2336_v26, %v3224_v37 }
0x1057   :  { %v3230_v46 = vunpack.i.h.bf16 %v3228_v44  ;;  %v3229_v47 = vunpack.i.l.bf16 %v3228_v44  ;;  %v2346_v51 = vpack.c.bf16 %v2339_v45, %v2339_v45  ;;  %v2304_v56 = vsel %vm77_vm4, %v3234_v14, %v3235_v41 }
0x1058   :  { %v2302_v52 = vpop.permute.xlu1 %2301  ;;  %2752 = vmatprep.subr.msk.bf16.mxu0 %vm130_vm3, %v2345_v43  ;;  %v2351_v53 = vsel %vm130_vm3, %v2344_v12, 0 }
0x1059   :  { %2362 = vmatpush1.bf16.msra.mxu0 %v2351_v53  ;;  %v2357_v54 = vsel %vm130_vm3, %v2346_v51, 0  ;;  %v2295_v55 = vsel %vm67_vm5, %v3229_v47, %v3230_v46  ;;  %v2303_v60 = vsel %vm77_vm4, %v3235_v41, %v2302_v52  ;;  %v2305_v61 = vsel %vm77_vm4, %v2302_v52, %v3234_v14 }
0x105a   :  { %2939 = vmatpush3.bf16.msra.mxu1 %v2357_v54  ;;  %v2293_v58 = vpop.permute.xlu0 %2292  ;;  %v2317_v59 = vpack.c.bf16 %v2304_v56, %v2295_v55 }
0x105b   :  { %v2294_v63 = vsel %vm67_vm5, %v3230_v46, %v2293_v58  ;;  %v2296_v24 = vsel %vm67_vm5, %v2293_v58, %v3229_v47  ;;  %2944 = vmatprep.subr.bf16.mxu1 %v3314_v0 }
0x105c   :  { %v2316_v2 = vpack.c.bf16 %v2305_v61, %v2296_v24  ;;  %v2318_v3 = vpack.c.bf16 %v2303_v60, %v2294_v63  ;;  %v2311_v48 = vpop.permute.xlu1 %2310  ;;  %2452 = vmatprep.subr.bf16.mxu0 %v2317_v59  ;;  %2753 = vmatmul.mubr.msk.bf16.vlgmr.msra.gmra.mrb[60].mxu0 %vm126_vm6, %v2751_v57 }
0x105d   :  { %2941 = vmatmul.mubr.msk.bf16.vlgmr.msra.gmra.mrb[60].mxu1 %vm126_vm6, %v2751_v57  ;;  %2484 = vmatprep.mubr.bf16.mxu0 %v3317_v5 }
0x105e   :  { %v3238_v4 = vpop.permute.xlu0 %3237  ;;  %2453 = vmatpush1.bf16.msra.mxu0 %v2316_v2  ;;  %2945 = vmatpush3.bf16.msra.mxu1 %v2318_v3 }
0x105f   :  { %v3240_v7 = vunpack.i.h.bf16 %v3238_v4  ;;  %v3239_v8 = vunpack.i.l.bf16 %v3238_v4  ;;  %2946 = vmatprep.subr.bf16.mxu1 %v3314_v0  ;;  %2948 = vmatprep.mubr.msk.bf16.mxu1 %vm3318_vm0, %v3314_v0 }
0x1060   :  { %v3248_v10 = vpop.permute.xlu1 %3247 }
0x1061   :  { %v2313_v11 = vsel %vm87_vm7, %v3239_v8, %v3240_v7  ;;  %v3250_v15 = vunpack.i.h.bf16 %v3248_v10  ;;  %v3249_v49 = vunpack.i.l.bf16 %v3248_v10  ;;  %v2314_v16 = vsel %vm87_vm7, %v2311_v48, %v3239_v8 }
0x1062   :  { %v2320_v17 = vpack.c.bf16 %v2313_v11, %v2313_v11  ;;  %v3243_v18 = vpop.permute.xlu0 %3242  ;;  %v2319_v62 = vpack.c.bf16 %v2314_v16, %v2314_v16  ;;  %v2312_v19 = vsel %vm87_vm7, %v3240_v7, %v2311_v48 }
0x1063   :  { %v3245_v20 = vunpack.i.h.bf16 %v3243_v18  ;;  %v3244_v50 = vunpack.i.l.bf16 %v3243_v18  ;;  %v2321_v21 = vpack.c.bf16 %v2312_v19, %v2312_v19  ;;  %v2548_v25 = vsel %vm330_vm8, %v3249_v49, %v3250_v15 }
0x1064   :  { %v2543_v1 = vpop.permute.xlu1 %2542  ;;  %2755 = vmatprep.subr.msk.bf16.mxu0 %vm130_vm3, %v2320_v17  ;;  %v2444_v6 = vsel %vm130_vm3, %v2319_v62, 0 }
0x1065   :  { %2455 = vmatpush1.bf16.msra.mxu0 %v2444_v6  ;;  %v2450_v13 = vsel %vm130_vm3, %v2321_v21, 0  ;;  %v2539_v23 = vsel %vm320_vm9, %v3244_v50, %v3245_v20  ;;  %v2549_v28 = vsel %vm330_vm8, %v2543_v1, %v3249_v49  ;;  %v2550_v29 = vsel %vm330_vm8, %v3250_v15, %v2543_v1 }
0x1066   :  { %2947 = vmatpush3.bf16.msra.mxu1 %v2450_v13  ;;  %v2534_v26 = vpop.permute.xlu0 %2533  ;;  %v2562_v27 = vpack.c.bf16 %v2548_v25, %v2539_v23 }
0x1067   :  { %v2540_v30 = vsel %vm320_vm9, %v2534_v26, %v3244_v50  ;;  %v2541_v31 = vsel %vm320_vm9, %v3245_v20, %v2534_v26  ;;  %2952 = vmatprep.subr.bf16.mxu1 %v3314_v0 }
0x1068   :  { %v2561_v32 = vpack.c.bf16 %v2549_v28, %v2540_v30  ;;  %v2563_v33 = vpack.c.bf16 %v2550_v29, %v2541_v31  ;;  %2756 = vmatmul.mubr.msk.bf16.vlgmr.msra.gmra.mrb[64].mxu0 %vm126_vm6, %v2315_v22  ;;  %2579 = vmatprep.subr.bf16.mxu0 %v2562_v27  ;;  %v2556_v40 = vpop.permute.xlu1 %2555 }
0x1069   :  { %2949 = vmatmul.mubr.msk.bf16.vlgmr.msra.gmra.mrb[64].mxu1 %vm126_vm6, %v2315_v22  ;;  %2611 = vmatprep.mubr.bf16.mxu0 %v3317_v5 }
0x106a   :  { %v3253_v34 = vpop.permute.xlu0 %3252  ;;  %2580 = vmatpush1.bf16.msra.mxu0 %v2561_v32  ;;  %2953 = vmatpush3.bf16.msra.mxu1 %v2563_v33 }
0x106b   :  { %v3255_v37 = vunpack.i.h.bf16 %v3253_v34  ;;  %v3254_v38 = vunpack.i.l.bf16 %v3253_v34  ;;  %2954 = vmatprep.subr.bf16.mxu1 %v3314_v0  ;;  %2956 = vmatprep.mubr.msk.bf16.mxu1 %vm3318_vm0, %v3314_v0  ;;  %v2758_v0 = vld [vmem:[%s4205_s10 + $0x8] sm:$0xf]  ;;  %s3325_s10 = smov [#allocation5]  }
0x106c   :  { %s2681_s27 = sshll.u32 %s3325_s10, 4  ;;  %s2682_s27 = int_to_ptr.vmem [resolvable:$true] %s2681_s27 }
0x106d   :  { %v2557_v41 = vsel %vm340_vm10, %v3255_v37, %v2556_v40  ;;  %v2558_v14 = vsel %vm340_vm10, %v3254_v38, %v3255_v37  ;;  %v2559_v5 = vsel %vm340_vm10, %v2556_v40, %v3254_v38  ;;  %s3287_s28 = scalar_lea.vmem %s2682_s27, 768  ;;  %p3292_p9 = scmp.lt.s32.totalorder %s2682_s27, %s2682_s27 }
0x106e   :  { %v2565_v42 = vpack.c.bf16 %v2557_v41, %v2557_v41  ;;  %v2564_v43 = vpack.c.bf16 %v2558_v14, %v2558_v14  ;;  %v2566_v44 = vpack.c.bf16 %v2559_v5, %v2559_v5  ;;  %p3288_p8 = scmp.ne.s32.totalorder %s2682_s27, %s3287_s28  ;;  %p3293_p10 = scmp.lt.s32.totalorder %s3287_s28, %s3287_s28 }
0x1070   :  { %2759 = vmatprep.subr.msk.bf16.mxu0 %vm130_vm3, %v2565_v42  ;;  %v2571_v12 = vsel %vm130_vm3, %v2564_v43, 0  ;;  %v2577_v45 = vsel %vm130_vm3, %v2566_v44, 0  ;;  %p3294_p11 = por %p3293_p10, %p3292_p9 }
0x1071   :  { %2582 = vmatpush1.bf16.msra.mxu0 %v2571_v12  ;;  %2955 = vmatpush3.bf16.msra.mxu1 %v2577_v45 }
0x1072   :  { %p3295_p12 = pnand %p3294_p11, %p3288_p8 }
0x1074   :  { %2760 = vmatmul.mubr.msk.bf16.vlgmr.msra.gmra.mrb[68].mxu0 %vm126_vm6, %v2758_v0  ;;  %2957 = vmatmul.mubr.msk.bf16.vlgmr.msra.gmra.mrb[68].mxu1 %vm126_vm6, %v2758_v0 }
0x1079   :  { %v2667_v7 = vpop.permute.xlu1 %2666 }
0x107b   :  { %v1374_v9 = vpop.permute.xlu0 %1373 }
0x107c   :  { %v1376_v46 = vadd.f32 %v1374_v9, %v3936_v35  ;;  %v1377_v47 = vadd.f32 %v1374_v9, %v3940_v39  ;;  %v1378_v51 = vadd.f32 %v1374_v9, %v3938_v36 }
0x107e   :  { %1379 = vst [vmem:[#allocation5] sm:$0xff] %v1376_v46  ;;  %1380 = vst [vmem:[#allocation5 + $0x8] sm:$0xff] %v1377_v47 }
0x107f   :  { %1381 = vst [vmem:[#allocation5 + $0x10] sm:$0xff] %v1378_v51 }
0x112f   :  { %v2393_v52 = vpop.f32.mrb[60].mxu0 }
0x1130   :  { %v2395_v53 = vpop.f32.mrb[61].mxu0  ;;  %v2434_v54 = vpop.f32.mrb[60].mxu1 }
0x1131   :  { %v2397_v55 = vpop.f32.mrb[62].mxu0  ;;  %v2942_v56 = vpop.f32.mrb[61].mxu1 }
0x1132   :  { %v2398_v57 = vpop.f32.mrb[63].mxu0  ;;  %v2437_v58 = vpop.f32.mrb[62].mxu1 }
0x1133   :  { %v2943_v59 = vpop.f32.mrb[63].mxu1 }
0x113b   :  { %v2486_v60 = vpop.f32.mrb[64].mxu0 }
0x113c   :  { %v2487_v61 = vadd.f32 %v2486_v60, %v2393_v52  ;;  %v2527_v63 = vpop.f32.mrb[64].mxu1  ;;  %v2488_v24 = vpop.f32.mrb[65].mxu0 }
0x113d   :  { %v2528_v35 = vadd.f32 %v2527_v63, %v2434_v54  ;;  %v2489_v2 = vadd.f32 %v2488_v24, %v2395_v53  ;;  %v2490_v39 = vpop.f32.mrb[66].mxu0  ;;  %v2950_v3 = vpop.f32.mrb[65].mxu1 }
0x113e   :  { %v2491_v36 = vpop.f32.mrb[67].mxu0  ;;  %v2530_v48 = vpop.f32.mrb[66].mxu1 }
0x113f   :  { %v2951_v4 = vpop.f32.mrb[67].mxu1 }
0x1147   :  { %v2613_v8 = vpop.f32.mrb[68].mxu0  ;;  %v2654_v10 = vpop.f32.mrb[68].mxu1 }
0x1148   :  { %v2660_v11 = vadd.f32 %v2613_v8, %v2487_v61  ;;  %v2662_v15 = vadd.f32 %v2654_v10, %v2528_v35  ;;  %v2615_v49 = vpop.f32.mrb[69].mxu0  ;;  %v2958_v16 = vpop.f32.mrb[69].mxu1 }
0x1149   :  { %v2661_v17 = vadd.f32 %v2615_v49, %v2489_v2  ;;  %v2617_v18 = vpop.f32.mrb[70].mxu0  ;;  %v2657_v62 = vpop.f32.mrb[70].mxu1 }
0x114a   :  { %v2669_v19 = vadd.f32 %v2667_v7, %v2660_v11  ;;  %v2671_v20 = vadd.f32 %v2667_v7, %v2662_v15  ;;  %v2618_v50 = vpop.f32.mrb[71].mxu0  ;;  %v2959_v21 = vpop.f32.mrb[71].mxu1 }
0x114b   :  { %v2670_v1 = vadd.f32 %v2667_v7, %v2661_v17 }
0x114c   :  { %2673 = vst [vmem:[#allocation5 + $0x18] sm:$0xff] %v2669_v19  ;;  %2675 = vst [vmem:[#allocation5 + $0x28] sm:$0xff] %v2671_v20 }
0x114d   :  { %2674 = vst [vmem:[#allocation5 + $0x20] sm:$0xff] %v2670_v1 }
0x114e   :  { %3298 = shalt.err (!%p3295_p12)
}
0x114f   :  { %s3299_s16 = scalar_lea.hbm %s4207_s12, 768 }
0x1150   :  { %p3300_p13 = scmp.ne.s32.totalorder %s4207_s12, %s3299_s16  ;;  %p3303_p0 = scmp.lt.u32.totalorder %s3299_s16, %s4207_s12 }
0x1152   :  { %p3305_p1 = pnand %p3303_p0, %p3300_p13 }
0x1154   :  { %3308 = shalt.err (!%p3305_p1)
}
0x1155   :  { %s3326_s0 = smov 384   ;;  %s3327_s2 = smov 24  }
0x1156   :  { %2687 = dma.vmem_to_hbm [thread:$0]  %s2682_s27, 768, %s4207_s12, [#allocation4], %s3326_s0, %s3326_s0, %s3327_s2  }
0x1157   :  { %3311 = dma.done.wait [#allocation4], 768  }
0x1158   :  { %3312 = vsyncadd [#allocation4], 4294966528 }
0x1159   :  { %2691 = vsyncpa [#allocation3], 1 }
0x115a   :  { %2692 = vsyncpa [#allocation4], 1 }

</bundles_post_ra>
